<compile_context>
chip_gen: v5e
topology: v5e:2x2
jax: 0.10.0
libtpu: 0.0.40
codegen_flags: <defaults>
</compile_context>

<pallas_src>
import jax
import jax.numpy as jnp
from jax.experimental import pallas as pl
from jax.experimental.pallas import tpu as pltpu


# ----------------------------------------------------------------------------
# helpers
# ----------------------------------------------------------------------------
def _round_up(x, m):
    return ((x + m - 1) // m) * m


def _row_tile(rows, max_tile=256):
    # >=256-row tiles for realistic sizes (fills the MXU / both cores); for tiny
    # examples just round up to a sublane multiple.
    if rows >= max_tile:
        return max_tile
    return _round_up(rows, 8)


def _pad_rows(a, tile):
    pad = (-a.shape[0]) % tile
    if pad:
        a = jnp.pad(a, ((0, pad), (0, 0)))
    return a


def _pick_time_block(t, max_tb=8):
    for tb in range(min(t, max_tb), 0, -1):
        if t % tb == 0:
            return tb
    return 1


# ----------------------------------------------------------------------------
# Kernel 1: batched input-gate projection (parallel over rows = T*B)
#   gx = x @ W_ih(rzn) + b_ih(rzn)
# ----------------------------------------------------------------------------
def _input_gates_kernel(x_ref, w_ref, b_ref, gx_ref):
    gx_ref[...] = (
        jnp.dot(x_ref[...].astype(jnp.bfloat16), w_ref[...],
                preferred_element_type=jnp.float32)
        + b_ref[...]
    )


# ----------------------------------------------------------------------------
# Kernel 2: sequential GRU recurrence (grid over time blocks, "arbitrary")
#   per step: gh = h @ W_hh(rzn) + b_hh ; r,z,n gates ; h' = (1-z)*n + z*h
# ----------------------------------------------------------------------------
def _gru_recurrent_kernel(gx_ref, h0_ref, whh_ref, bhh_ref,
                          h_seq_ref, h_last_ref, h_carry):
    t = pl.program_id(0)

    @pl.when(t == 0)
    def _():
        h_carry[...] = h0_ref[...]

    H = h0_ref.shape[-1]
    TB = gx_ref.shape[0]

    whh = whh_ref[...]          # (H, 3H) bf16, loaded once per block
    bhh = bhh_ref[...]          # (1, 3H) f32

    def step(i, h):
        gx = gx_ref[i]          # (B, 3H) f32, precomputed input gates (incl. b_ih)
        gh = jnp.dot(h.astype(jnp.bfloat16), whh,
                     preferred_element_type=jnp.float32) + bhh
        r = jax.nn.sigmoid(gx[:, 0:H] + gh[:, 0:H])
        z = jax.nn.sigmoid(gx[:, H:2 * H] + gh[:, H:2 * H])
        n = jnp.tanh(gx[:, 2 * H:3 * H] + r * gh[:, 2 * H:3 * H])
        h_new = (1.0 - z) * n + z * h
        h_seq_ref[i] = h_new
        return h_new

    h_final = jax.lax.fori_loop(0, TB, step, h_carry[...], unroll=True)
    h_carry[...] = h_final

    # Only the last grid step writes the final hidden state (no redundant stores).
    @pl.when(t == pl.num_programs(0) - 1)
    def _():
        h_last_ref[...] = h_final


# ----------------------------------------------------------------------------
# Kernel 3: output projection + log-softmax (parallel over rows = T*B)
# ----------------------------------------------------------------------------
def _proj_logsoftmax_kernel(h_ref, w_ref, b_ref, y_ref):
    logits = (
        jnp.dot(h_ref[...].astype(jnp.bfloat16), w_ref[...],
                preferred_element_type=jnp.float32)
        + b_ref[...]
    )
    m = jnp.max(logits, axis=-1, keepdims=True)
    s = logits - m
    lse = jnp.log(jnp.sum(jnp.exp(s), axis=-1, keepdims=True))
    y_ref[...] = s - lse


# ----------------------------------------------------------------------------
# Wrapper
# ----------------------------------------------------------------------------
def decoder_forward(params, x_tok, context, prev_hidden):
    """x_tok (B, T) int32, context (B, T, H), prev_hidden (1, B, H)
       -> y (B, T, V) log-probs, hidden (1, B, H)."""
    B, T = x_tok.shape
    E = params["embedding"].shape[-1]
    H = prev_hidden.shape[-1]
    V = params["w_out"].shape[-1]
    Din = E + H

    # ---- glue (XLA): embedding gather + concat + time-major layout ----
    # TODO(synk): training-mode dropout (p=0.5) not implemented (inference identity).
    # TODO(synk): embedding gather / concat could be folded into kernel 1 via
    #             scalar-prefetched token ids (pl.Element row gather) to skip the
    #             (B,T,E+H) HBM round-trip.
    emb = params["embedding"][x_tok]                       # (B, T, E)
    x_cat = jnp.concatenate([emb, context], axis=-1)       # (B, T, Din)
    x_tm = jnp.transpose(x_cat, (1, 0, 2)).reshape(T * B, Din)   # time-major rows

    R = T * B
    rm = _row_tile(R)
    x_rows = _pad_rows(x_tm, rm)
    Rp = x_rows.shape[0]

    # ---- kernel 1: batched input-gate matmul (hoisted out of the recurrence) ----
    gx = pl.pallas_call(
        _input_gates_kernel,
        out_shape=jax.ShapeDtypeStruct((Rp, 3 * H), jnp.float32),
        grid_spec=pltpu.PrefetchScalarGridSpec(
            num_scalar_prefetch=0,
            grid=(Rp // rm,),
            in_specs=[
                pl.BlockSpec((rm, Din), lambda i: (i, 0)),
                pl.BlockSpec((Din, 3 * H), lambda i: (0, 0)),   # resident bf16 weight
                pl.BlockSpec((1, 3 * H), lambda i: (0, 0)),
            ],
            out_specs=pl.BlockSpec((rm, 3 * H), lambda i: (i, 0)),
        ),
        compiler_params=pltpu.CompilerParams(dimension_semantics=("parallel",)),
    )(x_rows, params["w_ih"], params["b_ih"])

    gx = gx[:R].reshape(T, B, 3 * H)                       # time-major gate pre-acts

    # ---- kernel 2: sequential GRU recurrence (TB time steps per grid step) ----
    TB = _pick_time_block(T)
    h0 = prev_hidden[0]                                    # (B, H)

    h_seq, h_last = pl.pallas_call(
        _gru_recurrent_kernel,
        out_shape=(jax.ShapeDtypeStruct((T, B, H), jnp.float32),
                   jax.ShapeDtypeStruct((B, H), jnp.float32)),
        grid_spec=pltpu.PrefetchScalarGridSpec(
            num_scalar_prefetch=0,
            grid=(T // TB,),
            in_specs=[
                pl.BlockSpec((TB, B, 3 * H), lambda t: (t, 0, 0)),   # precomputed gx
                pl.BlockSpec((B, H), lambda t: (0, 0)),              # h0
                pl.BlockSpec((H, 3 * H), lambda t: (0, 0)),          # fused W_hh (bf16)
                pl.BlockSpec((1, 3 * H), lambda t: (0, 0)),          # fused b_hh
            ],
            out_specs=[
                pl.BlockSpec((TB, B, H), lambda t: (t, 0, 0)),       # all h_t
                pl.BlockSpec((B, H), lambda t: (0, 0)),              # final hidden
            ],
            scratch_shapes=[pltpu.VMEM((B, H), jnp.float32)],
        ),
        compiler_params=pltpu.CompilerParams(dimension_semantics=("arbitrary",)),
    )(gx, h0, params["w_hh"], params["b_hh"])

    # ---- kernel 3: output projection + log-softmax (row-parallel) ----
    # TODO(synk): for large vocabularies, additionally tile W_out over V (two-pass
    #             log-softmax) and single-buffer the constant weight specs so W_out
    #             never has to be fully (double-)resident in VMEM (v7x: 64 MiB).
    h_rows = _pad_rows(h_seq.reshape(R, H), rm)            # zero-padded rows are safe
    Rp2 = h_rows.shape[0]

    y2d = pl.pallas_call(
        _proj_logsoftmax_kernel,
        out_shape=jax.ShapeDtypeStruct((Rp2, V), jnp.float32),
        grid_spec=pltpu.PrefetchScalarGridSpec(
            num_scalar_prefetch=0,
            grid=(Rp2 // rm,),
            in_specs=[
                pl.BlockSpec((rm, H), lambda i: (i, 0)),
                pl.BlockSpec((H, V), lambda i: (0, 0)),     # resident bf16 weight
                pl.BlockSpec((1, V), lambda i: (0, 0)),
            ],
            out_specs=pl.BlockSpec((rm, V), lambda i: (i, 0)),
        ),
        compiler_params=pltpu.CompilerParams(dimension_semantics=("parallel",)),
    )(h_rows, params["w_out"], params["b_out"])

    y = jnp.transpose(y2d[:R].reshape(T, B, V), (1, 0, 2))  # back to (B, T, V)
    hidden = h_last[None]                                   # (1, B, H)
    return y, hidden


# ----------------------------------------------------------------------------
# Deterministic parameter init (PyTorch-shaped, then packed for the kernels)
# ----------------------------------------------------------------------------
def init_params(key, output_size, embed_size, hidden_size):
    V, E, H = output_size, embed_size, hidden_size
    ks = jax.random.split(key, 7)
    bound = 1.0 / jnp.sqrt(H)

    embedding = jax.random.normal(ks[0], (V, E), jnp.float32)                 # nn.Embedding
    w_ih = jax.random.uniform(ks[1], (3 * H, E + H), jnp.float32, -bound, bound)  # rows [r;z;n]
    w_hh = jax.random.uniform(ks[2], (3 * H, H), jnp.float32, -bound, bound)
    b_ih = jax.random.uniform(ks[3], (3 * H,), jnp.float32, -bound, bound)
    b_hh = jax.random.uniform(ks[4], (3 * H,), jnp.float32, -bound, bound)
    w_lin = jax.random.uniform(ks[5], (V, H), jnp.float32, -bound, bound)
    b_lin = jax.random.uniform(ks[6], (V,), jnp.float32, -bound, bound)

    return {
        "embedding": embedding,
        # fused, transposed so kernels do x @ W; columns ordered [r | z | n].
        # MXU operands stored in bf16 (f32 accumulation inside the kernels).
        "w_ih": w_ih.T.astype(jnp.bfloat16),            # (E+H, 3H)
        "b_ih": b_ih.reshape(1, 3 * H),                 # f32
        "w_hh": w_hh.T.astype(jnp.bfloat16),            # (H, 3H)
        "b_hh": b_hh.reshape(1, 3 * H),                 # f32
        "w_out": w_lin.T.astype(jnp.bfloat16),          # (H, V)
        "b_out": b_lin.reshape(1, V),                   # f32
    }


# ----------------------------------------------------------------------------
# Pure-JAX reference (same math, f32) for a correctness check
# ----------------------------------------------------------------------------
def decoder_reference(params, x_tok, context, prev_hidden):
    H = prev_hidden.shape[-1]
    w_ih = params["w_ih"].astype(jnp.float32)
    w_hh = params["w_hh"].astype(jnp.float32)
    w_out = params["w_out"].astype(jnp.float32)

    emb = params["embedding"][x_tok]
    x_cat = jnp.concatenate([emb, context], axis=-1)       # (B, T, E+H)
    h0 = prev_hidden[0]

    def step(h, x_t):
        gx = jnp.dot(x_t, w_ih) + params["b_ih"]
        gh = jnp.dot(h, w_hh) + params["b_hh"]
        r = jax.nn.sigmoid(gx[:, :H] + gh[:, :H])
        z = jax.nn.sigmoid(gx[:, H:2 * H] + gh[:, H:2 * H])
        n = jnp.tanh(gx[:, 2 * H:] + r * gh[:, 2 * H:])
        h_new = (1.0 - z) * n + z * h
        return h_new, h_new

    h_last, hs = jax.lax.scan(step, h0, jnp.transpose(x_cat, (1, 0, 2)))
    out = jnp.transpose(hs, (1, 0, 2))                     # (B, T, H)
    logits = jnp.dot(out, w_out) + params["b_out"]
    y = jax.nn.log_softmax(logits, axis=-1)
    return y, h_last[None]


# ----------------------------------------------------------------------------
if __name__ == "__main__":
    B, T = 2, 16
    output_size, embed_size, hidden_size = 32, 16, 32

    key = jax.random.PRNGKey(0)
    kp, kx, kc, kh = jax.random.split(key, 4)

    params = init_params(kp, output_size, embed_size, hidden_size)
    x_tok = jax.random.randint(kx, (B, T), 0, output_size, dtype=jnp.int32)
    context = jax.random.normal(kc, (B, T, hidden_size), jnp.float32)
    prev_hidden = jax.random.normal(kh, (1, B, hidden_size), jnp.float32)

    y, hidden = jax.jit(decoder_forward)(params, x_tok, context, prev_hidden)
    jax.block_until_ready((y, hidden))

    y_ref, h_ref = decoder_reference(params, x_tok, context, prev_hidden)
    assert y.shape == (B, T, output_size)
    assert hidden.shape == (1, B, hidden_size)
    # bf16 MXU operands (per perf review) -> looser tolerance than f32-HIGHEST.
    assert jnp.allclose(y, y_ref, atol=3e-2, rtol=3e-2)
    assert jnp.allclose(hidden, h_ref, atol=3e-2, rtol=3e-2)

    print("KERNEL_OK")
</pallas_src>

<mosaic_0001>
module attributes {stable_mosaic.version = 11 : i64} {
  func.func @_gru_recurrent_kernel(%arg0: i32, %arg1: memref<8x2x96xf32, #tpu.memory_space<vmem>>, %arg2: memref<2x32xf32, #tpu.memory_space<vmem>>, %arg3: memref<32x96xbf16, #tpu.memory_space<vmem>>, %arg4: memref<1x96xf32, #tpu.memory_space<vmem>>, %arg5: memref<8x2x32xf32, #tpu.memory_space<vmem>>, %arg6: memref<2x32xf32, #tpu.memory_space<vmem>>, %arg7: memref<2x32xf32, #tpu.memory_space<vmem>>) attributes {dimension_semantics = [#tpu.dimension_semantics<arbitrary>], iteration_bounds = array<i64: 2>, scalar_prefetch = 0 : i64, scratch_operands = 1 : i64, tpu.core_type = #tpu.core_type<tc>, window_params = [{transform_indices = @transform_0, window_bounds = array<i64: 8, 2, 96>}, {pipeline_mode = #tpu.pipeline_mode<synchronous>, transform_indices = @transform_1, window_bounds = array<i64: 2, 32>}, {pipeline_mode = #tpu.pipeline_mode<synchronous>, transform_indices = @transform_2, window_bounds = array<i64: 32, 96>}, {pipeline_mode = #tpu.pipeline_mode<synchronous>, transform_indices = @transform_3, window_bounds = array<i64: 1, 96>}, {transform_indices = @transform_4, window_bounds = array<i64: 8, 2, 32>}, {pipeline_mode = #tpu.pipeline_mode<synchronous>, transform_indices = @transform_5, window_bounds = array<i64: 2, 32>}]} {
    %c0_i32 = arith.constant 0 : i32
    %0 = arith.cmpi eq, %arg0, %c0_i32 : i32
    %1 = arith.extui %0 : i1 to i32
    %c0_i32_0 = arith.constant 0 : i32
    %2 = arith.cmpi ne, %1, %c0_i32_0 : i32
    scf.if %2 {
      %c0_74 = arith.constant 0 : index
      %c0_75 = arith.constant 0 : index
      %306 = vector.load %arg2[%c0_74, %c0_75] : memref<2x32xf32, #tpu.memory_space<vmem>>, vector<2x32xf32>
      %c0_76 = arith.constant 0 : index
      %c0_77 = arith.constant 0 : index
      %307 = vector.load %arg7[%c0_76, %c0_77] : memref<2x32xf32, #tpu.memory_space<vmem>>, vector<2x32xf32>
      tpu.vector_store %arg7[%c0_76, %c0_77], %306 {strides = array<i32>} : memref<2x32xf32, #tpu.memory_space<vmem>>, vector<2x32xf32>,
    } else {
    }
    %c0 = arith.constant 0 : index
    %c0_1 = arith.constant 0 : index
    %3 = vector.load %arg3[%c0, %c0_1] : memref<32x96xbf16, #tpu.memory_space<vmem>>, vector<32x96xbf16>
    %c0_2 = arith.constant 0 : index
    %c0_3 = arith.constant 0 : index
    %4 = vector.load %arg4[%c0_2, %c0_3] : memref<1x96xf32, #tpu.memory_space<vmem>>, vector<1x96xf32>
    %c0_4 = arith.constant 0 : index
    %c0_5 = arith.constant 0 : index
    %5 = vector.load %arg7[%c0_4, %c0_5] : memref<2x32xf32, #tpu.memory_space<vmem>>, vector<2x32xf32>
    %c0_i32_6 = arith.constant 0 : i32
    %6 = arith.index_cast %c0_i32_6 : i32 to index
    %c0_7 = arith.constant 0 : index
    %c0_8 = arith.constant 0 : index
    %7 = vector.load %arg1[%6, %c0_7, %c0_8] : memref<8x2x96xf32, #tpu.memory_space<vmem>>, vector<1x2x96xf32>
    %8 = vector.shape_cast %7 : vector<1x2x96xf32> to vector<2x96xf32>
    %9 = arith.truncf %5 : vector<2x32xf32> to vector<2x32xbf16>
    %cst = arith.constant dense<0.000000e+00> : vector<2x96xf32>
    %10 = tpu.matmul %9, %3, %cst {dimension_numbers = #tpu.dot_dimension_numbers<[1], [0], [0], [1], [0, 0, 1, 1], [], []>} : vector<2x32xbf16>, vector<32x96xbf16>, vector<2x96xf32> -> vector<2x96xf32>
    %11 = vector.broadcast %4 : vector<1x96xf32> to vector<2x96xf32>
    %12 = arith.addf %10, %11 : vector<2x96xf32>
    %13 = vector.extract_strided_slice %8 {offsets = [0, 0], sizes = [2, 32], strides = [1, 1]} : vector<2x96xf32> to vector<2x32xf32>
    %14 = vector.extract_strided_slice %12 {offsets = [0, 0], sizes = [2, 32], strides = [1, 1]} : vector<2x96xf32> to vector<2x32xf32>
    %15 = arith.addf %13, %14 : vector<2x32xf32>
    %16 = arith.negf %15 : vector<2x32xf32>
    %17 = math.exp %16 : vector<2x32xf32>
    %cst_9 = arith.constant 1.000000e+00 : f32
    %18 = vector.broadcast %cst_9 : f32 to vector<2x32xf32>
    %19 = arith.addf %18, %17 : vector<2x32xf32>
    %20 = arith.divf %18, %19 : vector<2x32xf32>
    %21 = vector.extract_strided_slice %8 {offsets = [0, 32], sizes = [2, 32], strides = [1, 1]} : vector<2x96xf32> to vector<2x32xf32>
    %22 = vector.extract_strided_slice %12 {offsets = [0, 32], sizes = [2, 32], strides = [1, 1]} : vector<2x96xf32> to vector<2x32xf32>
    %23 = arith.addf %21, %22 : vector<2x32xf32>
    %24 = arith.negf %23 : vector<2x32xf32>
    %25 = math.exp %24 : vector<2x32xf32>
    %cst_10 = arith.constant 1.000000e+00 : f32
    %26 = vector.broadcast %cst_10 : f32 to vector<2x32xf32>
    %27 = arith.addf %26, %25 : vector<2x32xf32>
    %28 = arith.divf %26, %27 : vector<2x32xf32>
    %29 = vector.extract_strided_slice %8 {offsets = [0, 64], sizes = [2, 32], strides = [1, 1]} : vector<2x96xf32> to vector<2x32xf32>
    %30 = vector.extract_strided_slice %12 {offsets = [0, 64], sizes = [2, 32], strides = [1, 1]} : vector<2x96xf32> to vector<2x32xf32>
    %31 = arith.mulf %20, %30 : vector<2x32xf32>
    %32 = arith.addf %29, %31 : vector<2x32xf32>
    %33 = math.tanh %32 : vector<2x32xf32>
    %cst_11 = arith.constant 1.000000e+00 : f32
    %34 = vector.broadcast %cst_11 : f32 to vector<2x32xf32>
    %35 = arith.subf %34, %28 : vector<2x32xf32>
    %36 = arith.mulf %35, %33 : vector<2x32xf32>
    %37 = arith.mulf %28, %5 : vector<2x32xf32>
    %38 = arith.addf %36, %37 : vector<2x32xf32>
    %39 = arith.index_cast %c0_i32_6 : i32 to index
    %c0_12 = arith.constant 0 : index
    %c0_13 = arith.constant 0 : index
    %40 = vector.load %arg5[%39, %c0_12, %c0_13] : memref<8x2x32xf32, #tpu.memory_space<vmem>>, vector<1x2x32xf32>
    %41 = vector.shape_cast %40 : vector<1x2x32xf32> to vector<2x32xf32>
    %42 = vector.shape_cast %38 : vector<2x32xf32> to vector<1x2x32xf32>
    tpu.vector_store %arg5[%39, %c0_12, %c0_13], %42 {strides = array<i32>} : memref<8x2x32xf32, #tpu.memory_space<vmem>>, vector<1x2x32xf32>,
    %c1_i32 = arith.constant 1 : i32
    %43 = arith.index_cast %c1_i32 : i32 to index
    %c0_14 = arith.constant 0 : index
    %c0_15 = arith.constant 0 : index
    %44 = vector.load %arg1[%43, %c0_14, %c0_15] : memref<8x2x96xf32, #tpu.memory_space<vmem>>, vector<1x2x96xf32>
    %45 = vector.shape_cast %44 : vector<1x2x96xf32> to vector<2x96xf32>
    %46 = arith.truncf %38 : vector<2x32xf32> to vector<2x32xbf16>
    %cst_16 = arith.constant dense<0.000000e+00> : vector<2x96xf32>
    %47 = tpu.matmul %46, %3, %cst_16 {dimension_numbers = #tpu.dot_dimension_numbers<[1], [0], [0], [1], [0, 0, 1, 1], [], []>} : vector<2x32xbf16>, vector<32x96xbf16>, vector<2x96xf32> -> vector<2x96xf32>
    %48 = vector.broadcast %4 : vector<1x96xf32> to vector<2x96xf32>
    %49 = arith.addf %47, %48 : vector<2x96xf32>
    %50 = vector.extract_strided_slice %45 {offsets = [0, 0], sizes = [2, 32], strides = [1, 1]} : vector<2x96xf32> to vector<2x32xf32>
    %51 = vector.extract_strided_slice %49 {offsets = [0, 0], sizes = [2, 32], strides = [1, 1]} : vector<2x96xf32> to vector<2x32xf32>
    %52 = arith.addf %50, %51 : vector<2x32xf32>
    %53 = arith.negf %52 : vector<2x32xf32>
    %54 = math.exp %53 : vector<2x32xf32>
    %cst_17 = arith.constant 1.000000e+00 : f32
    %55 = vector.broadcast %cst_17 : f32 to vector<2x32xf32>
    %56 = arith.addf %55, %54 : vector<2x32xf32>
    %57 = arith.divf %55, %56 : vector<2x32xf32>
    %58 = vector.extract_strided_slice %45 {offsets = [0, 32], sizes = [2, 32], strides = [1, 1]} : vector<2x96xf32> to vector<2x32xf32>
    %59 = vector.extract_strided_slice %49 {offsets = [0, 32], sizes = [2, 32], strides = [1, 1]} : vector<2x96xf32> to vector<2x32xf32>
    %60 = arith.addf %58, %59 : vector<2x32xf32>
    %61 = arith.negf %60 : vector<2x32xf32>
    %62 = math.exp %61 : vector<2x32xf32>
    %cst_18 = arith.constant 1.000000e+00 : f32
    %63 = vector.broadcast %cst_18 : f32 to vector<2x32xf32>
    %64 = arith.addf %63, %62 : vector<2x32xf32>
    %65 = arith.divf %63, %64 : vector<2x32xf32>
    %66 = vector.extract_strided_slice %45 {offsets = [0, 64], sizes = [2, 32], strides = [1, 1]} : vector<2x96xf32> to vector<2x32xf32>
    %67 = vector.extract_strided_slice %49 {offsets = [0, 64], sizes = [2, 32], strides = [1, 1]} : vector<2x96xf32> to vector<2x32xf32>
    %68 = arith.mulf %57, %67 : vector<2x32xf32>
    %69 = arith.addf %66, %68 : vector<2x32xf32>
    %70 = math.tanh %69 : vector<2x32xf32>
    %cst_19 = arith.constant 1.000000e+00 : f32
    %71 = vector.broadcast %cst_19 : f32 to vector<2x32xf32>
    %72 = arith.subf %71, %65 : vector<2x32xf32>
    %73 = arith.mulf %72, %70 : vector<2x32xf32>
    %74 = arith.mulf %65, %38 : vector<2x32xf32>
    %75 = arith.addf %73, %74 : vector<2x32xf32>
    %76 = arith.index_cast %c1_i32 : i32 to index
    %c0_20 = arith.constant 0 : index
    %c0_21 = arith.constant 0 : index
    %77 = vector.load %arg5[%76, %c0_20, %c0_21] : memref<8x2x32xf32, #tpu.memory_space<vmem>>, vector<1x2x32xf32>
    %78 = vector.shape_cast %77 : vector<1x2x32xf32> to vector<2x32xf32>
    %79 = vector.shape_cast %75 : vector<2x32xf32> to vector<1x2x32xf32>
    tpu.vector_store %arg5[%76, %c0_20, %c0_21], %79 {strides = array<i32>} : memref<8x2x32xf32, #tpu.memory_space<vmem>>, vector<1x2x32xf32>,
    %c2_i32 = arith.constant 2 : i32
    %80 = arith.index_cast %c2_i32 : i32 to index
    %c0_22 = arith.constant 0 : index
    %c0_23 = arith.constant 0 : index
    %81 = vector.load %arg1[%80, %c0_22, %c0_23] : memref<8x2x96xf32, #tpu.memory_space<vmem>>, vector<1x2x96xf32>
    %82 = vector.shape_cast %81 : vector<1x2x96xf32> to vector<2x96xf32>
    %83 = arith.truncf %75 : vector<2x32xf32> to vector<2x32xbf16>
    %cst_24 = arith.constant dense<0.000000e+00> : vector<2x96xf32>
    %84 = tpu.matmul %83, %3, %cst_24 {dimension_numbers = #tpu.dot_dimension_numbers<[1], [0], [0], [1], [0, 0, 1, 1], [], []>} : vector<2x32xbf16>, vector<32x96xbf16>, vector<2x96xf32> -> vector<2x96xf32>
    %85 = vector.broadcast %4 : vector<1x96xf32> to vector<2x96xf32>
    %86 = arith.addf %84, %85 : vector<2x96xf32>
    %87 = vector.extract_strided_slice %82 {offsets = [0, 0], sizes = [2, 32], strides = [1, 1]} : vector<2x96xf32> to vector<2x32xf32>
    %88 = vector.extract_strided_slice %86 {offsets = [0, 0], sizes = [2, 32], strides = [1, 1]} : vector<2x96xf32> to vector<2x32xf32>
    %89 = arith.addf %87, %88 : vector<2x32xf32>
    %90 = arith.negf %89 : vector<2x32xf32>
    %91 = math.exp %90 : vector<2x32xf32>
    %cst_25 = arith.constant 1.000000e+00 : f32
    %92 = vector.broadcast %cst_25 : f32 to vector<2x32xf32>
    %93 = arith.addf %92, %91 : vector<2x32xf32>
    %94 = arith.divf %92, %93 : vector<2x32xf32>
    %95 = vector.extract_strided_slice %82 {offsets = [0, 32], sizes = [2, 32], strides = [1, 1]} : vector<2x96xf32> to vector<2x32xf32>
    %96 = vector.extract_strided_slice %86 {offsets = [0, 32], sizes = [2, 32], strides = [1, 1]} : vector<2x96xf32> to vector<2x32xf32>
    %97 = arith.addf %95, %96 : vector<2x32xf32>
    %98 = arith.negf %97 : vector<2x32xf32>
    %99 = math.exp %98 : vector<2x32xf32>
    %cst_26 = arith.constant 1.000000e+00 : f32
    %100 = vector.broadcast %cst_26 : f32 to vector<2x32xf32>
    %101 = arith.addf %100, %99 : vector<2x32xf32>
    %102 = arith.divf %100, %101 : vector<2x32xf32>
    %103 = vector.extract_strided_slice %82 {offsets = [0, 64], sizes = [2, 32], strides = [1, 1]} : vector<2x96xf32> to vector<2x32xf32>
    %104 = vector.extract_strided_slice %86 {offsets = [0, 64], sizes = [2, 32], strides = [1, 1]} : vector<2x96xf32> to vector<2x32xf32>
    %105 = arith.mulf %94, %104 : vector<2x32xf32>
    %106 = arith.addf %103, %105 : vector<2x32xf32>
    %107 = math.tanh %106 : vector<2x32xf32>
    %cst_27 = arith.constant 1.000000e+00 : f32
    %108 = vector.broadcast %cst_27 : f32 to vector<2x32xf32>
    %109 = arith.subf %108, %102 : vector<2x32xf32>
    %110 = arith.mulf %109, %107 : vector<2x32xf32>
    %111 = arith.mulf %102, %75 : vector<2x32xf32>
    %112 = arith.addf %110, %111 : vector<2x32xf32>
    %113 = arith.index_cast %c2_i32 : i32 to index
    %c0_28 = arith.constant 0 : index
    %c0_29 = arith.constant 0 : index
    %114 = vector.load %arg5[%113, %c0_28, %c0_29] : memref<8x2x32xf32, #tpu.memory_space<vmem>>, vector<1x2x32xf32>
    %115 = vector.shape_cast %114 : vector<1x2x32xf32> to vector<2x32xf32>
    %116 = vector.shape_cast %112 : vector<2x32xf32> to vector<1x2x32xf32>
    tpu.vector_store %arg5[%113, %c0_28, %c0_29], %116 {strides = array<i32>} : memref<8x2x32xf32, #tpu.memory_space<vmem>>, vector<1x2x32xf32>,
    %c3_i32 = arith.constant 3 : i32
    %117 = arith.index_cast %c3_i32 : i32 to index
    %c0_30 = arith.constant 0 : index
    %c0_31 = arith.constant 0 : index
    %118 = vector.load %arg1[%117, %c0_30, %c0_31] : memref<8x2x96xf32, #tpu.memory_space<vmem>>, vector<1x2x96xf32>
    %119 = vector.shape_cast %118 : vector<1x2x96xf32> to vector<2x96xf32>
    %120 = arith.truncf %112 : vector<2x32xf32> to vector<2x32xbf16>
    %cst_32 = arith.constant dense<0.000000e+00> : vector<2x96xf32>
    %121 = tpu.matmul %120, %3, %cst_32 {dimension_numbers = #tpu.dot_dimension_numbers<[1], [0], [0], [1], [0, 0, 1, 1], [], []>} : vector<2x32xbf16>, vector<32x96xbf16>, vector<2x96xf32> -> vector<2x96xf32>
    %122 = vector.broadcast %4 : vector<1x96xf32> to vector<2x96xf32>
    %123 = arith.addf %121, %122 : vector<2x96xf32>
    %124 = vector.extract_strided_slice %119 {offsets = [0, 0], sizes = [2, 32], strides = [1, 1]} : vector<2x96xf32> to vector<2x32xf32>
    %125 = vector.extract_strided_slice %123 {offsets = [0, 0], sizes = [2, 32], strides = [1, 1]} : vector<2x96xf32> to vector<2x32xf32>
    %126 = arith.addf %124, %125 : vector<2x32xf32>
    %127 = arith.negf %126 : vector<2x32xf32>
    %128 = math.exp %127 : vector<2x32xf32>
    %cst_33 = arith.constant 1.000000e+00 : f32
    %129 = vector.broadcast %cst_33 : f32 to vector<2x32xf32>
    %130 = arith.addf %129, %128 : vector<2x32xf32>
    %131 = arith.divf %129, %130 : vector<2x32xf32>
    %132 = vector.extract_strided_slice %119 {offsets = [0, 32], sizes = [2, 32], strides = [1, 1]} : vector<2x96xf32> to vector<2x32xf32>
    %133 = vector.extract_strided_slice %123 {offsets = [0, 32], sizes = [2, 32], strides = [1, 1]} : vector<2x96xf32> to vector<2x32xf32>
    %134 = arith.addf %132, %133 : vector<2x32xf32>
    %135 = arith.negf %134 : vector<2x32xf32>
    %136 = math.exp %135 : vector<2x32xf32>
    %cst_34 = arith.constant 1.000000e+00 : f32
    %137 = vector.broadcast %cst_34 : f32 to vector<2x32xf32>
    %138 = arith.addf %137, %136 : vector<2x32xf32>
    %139 = arith.divf %137, %138 : vector<2x32xf32>
    %140 = vector.extract_strided_slice %119 {offsets = [0, 64], sizes = [2, 32], strides = [1, 1]} : vector<2x96xf32> to vector<2x32xf32>
    %141 = vector.extract_strided_slice %123 {offsets = [0, 64], sizes = [2, 32], strides = [1, 1]} : vector<2x96xf32> to vector<2x32xf32>
    %142 = arith.mulf %131, %141 : vector<2x32xf32>
    %143 = arith.addf %140, %142 : vector<2x32xf32>
    %144 = math.tanh %143 : vector<2x32xf32>
    %cst_35 = arith.constant 1.000000e+00 : f32
    %145 = vector.broadcast %cst_35 : f32 to vector<2x32xf32>
    %146 = arith.subf %145, %139 : vector<2x32xf32>
    %147 = arith.mulf %146, %144 : vector<2x32xf32>
    %148 = arith.mulf %139, %112 : vector<2x32xf32>
    %149 = arith.addf %147, %148 : vector<2x32xf32>
    %150 = arith.index_cast %c3_i32 : i32 to index
    %c0_36 = arith.constant 0 : index
    %c0_37 = arith.constant 0 : index
    %151 = vector.load %arg5[%150, %c0_36, %c0_37] : memref<8x2x32xf32, #tpu.memory_space<vmem>>, vector<1x2x32xf32>
    %152 = vector.shape_cast %151 : vector<1x2x32xf32> to vector<2x32xf32>
    %153 = vector.shape_cast %149 : vector<2x32xf32> to vector<1x2x32xf32>
    tpu.vector_store %arg5[%150, %c0_36, %c0_37], %153 {strides = array<i32>} : memref<8x2x32xf32, #tpu.memory_space<vmem>>, vector<1x2x32xf32>,
    %c4_i32 = arith.constant 4 : i32
    %154 = arith.index_cast %c4_i32 : i32 to index
    %c0_38 = arith.constant 0 : index
    %c0_39 = arith.constant 0 : index
    %155 = vector.load %arg1[%154, %c0_38, %c0_39] : memref<8x2x96xf32, #tpu.memory_space<vmem>>, vector<1x2x96xf32>
    %156 = vector.shape_cast %155 : vector<1x2x96xf32> to vector<2x96xf32>
    %157 = arith.truncf %149 : vector<2x32xf32> to vector<2x32xbf16>
    %cst_40 = arith.constant dense<0.000000e+00> : vector<2x96xf32>
    %158 = tpu.matmul %157, %3, %cst_40 {dimension_numbers = #tpu.dot_dimension_numbers<[1], [0], [0], [1], [0, 0, 1, 1], [], []>} : vector<2x32xbf16>, vector<32x96xbf16>, vector<2x96xf32> -> vector<2x96xf32>
    %159 = vector.broadcast %4 : vector<1x96xf32> to vector<2x96xf32>
    %160 = arith.addf %158, %159 : vector<2x96xf32>
    %161 = vector.extract_strided_slice %156 {offsets = [0, 0], sizes = [2, 32], strides = [1, 1]} : vector<2x96xf32> to vector<2x32xf32>
    %162 = vector.extract_strided_slice %160 {offsets = [0, 0], sizes = [2, 32], strides = [1, 1]} : vector<2x96xf32> to vector<2x32xf32>
    %163 = arith.addf %161, %162 : vector<2x32xf32>
    %164 = arith.negf %163 : vector<2x32xf32>
    %165 = math.exp %164 : vector<2x32xf32>
    %cst_41 = arith.constant 1.000000e+00 : f32
    %166 = vector.broadcast %cst_41 : f32 to vector<2x32xf32>
    %167 = arith.addf %166, %165 : vector<2x32xf32>
    %168 = arith.divf %166, %167 : vector<2x32xf32>
    %169 = vector.extract_strided_slice %156 {offsets = [0, 32], sizes = [2, 32], strides = [1, 1]} : vector<2x96xf32> to vector<2x32xf32>
    %170 = vector.extract_strided_slice %160 {offsets = [0, 32], sizes = [2, 32], strides = [1, 1]} : vector<2x96xf32> to vector<2x32xf32>
    %171 = arith.addf %169, %170 : vector<2x32xf32>
    %172 = arith.negf %171 : vector<2x32xf32>
    %173 = math.exp %172 : vector<2x32xf32>
    %cst_42 = arith.constant 1.000000e+00 : f32
    %174 = vector.broadcast %cst_42 : f32 to vector<2x32xf32>
    %175 = arith.addf %174, %173 : vector<2x32xf32>
    %176 = arith.divf %174, %175 : vector<2x32xf32>
    %177 = vector.extract_strided_slice %156 {offsets = [0, 64], sizes = [2, 32], strides = [1, 1]} : vector<2x96xf32> to vector<2x32xf32>
    %178 = vector.extract_strided_slice %160 {offsets = [0, 64], sizes = [2, 32], strides = [1, 1]} : vector<2x96xf32> to vector<2x32xf32>
    %179 = arith.mulf %168, %178 : vector<2x32xf32>
    %180 = arith.addf %177, %179 : vector<2x32xf32>
    %181 = math.tanh %180 : vector<2x32xf32>
    %cst_43 = arith.constant 1.000000e+00 : f32
    %182 = vector.broadcast %cst_43 : f32 to vector<2x32xf32>
    %183 = arith.subf %182, %176 : vector<2x32xf32>
    %184 = arith.mulf %183, %181 : vector<2x32xf32>
    %185 = arith.mulf %176, %149 : vector<2x32xf32>
    %186 = arith.addf %184, %185 : vector<2x32xf32>
    %187 = arith.index_cast %c4_i32 : i32 to index
    %c0_44 = arith.constant 0 : index
    %c0_45 = arith.constant 0 : index
    %188 = vector.load %arg5[%187, %c0_44, %c0_45] : memref<8x2x32xf32, #tpu.memory_space<vmem>>, vector<1x2x32xf32>
    %189 = vector.shape_cast %188 : vector<1x2x32xf32> to vector<2x32xf32>
    %190 = vector.shape_cast %186 : vector<2x32xf32> to vector<1x2x32xf32>
    tpu.vector_store %arg5[%187, %c0_44, %c0_45], %190 {strides = array<i32>} : memref<8x2x32xf32, #tpu.memory_space<vmem>>, vector<1x2x32xf32>,
    %c5_i32 = arith.constant 5 : i32
    %191 = arith.index_cast %c5_i32 : i32 to index
    %c0_46 = arith.constant 0 : index
    %c0_47 = arith.constant 0 : index
    %192 = vector.load %arg1[%191, %c0_46, %c0_47] : memref<8x2x96xf32, #tpu.memory_space<vmem>>, vector<1x2x96xf32>
    %193 = vector.shape_cast %192 : vector<1x2x96xf32> to vector<2x96xf32>
    %194 = arith.truncf %186 : vector<2x32xf32> to vector<2x32xbf16>
    %cst_48 = arith.constant dense<0.000000e+00> : vector<2x96xf32>
    %195 = tpu.matmul %194, %3, %cst_48 {dimension_numbers = #tpu.dot_dimension_numbers<[1], [0], [0], [1], [0, 0, 1, 1], [], []>} : vector<2x32xbf16>, vector<32x96xbf16>, vector<2x96xf32> -> vector<2x96xf32>
    %196 = vector.broadcast %4 : vector<1x96xf32> to vector<2x96xf32>
    %197 = arith.addf %195, %196 : vector<2x96xf32>
    %198 = vector.extract_strided_slice %193 {offsets = [0, 0], sizes = [2, 32], strides = [1, 1]} : vector<2x96xf32> to vector<2x32xf32>
    %199 = vector.extract_strided_slice %197 {offsets = [0, 0], sizes = [2, 32], strides = [1, 1]} : vector<2x96xf32> to vector<2x32xf32>
    %200 = arith.addf %198, %199 : vector<2x32xf32>
    %201 = arith.negf %200 : vector<2x32xf32>
    %202 = math.exp %201 : vector<2x32xf32>
    %cst_49 = arith.constant 1.000000e+00 : f32
    %203 = vector.broadcast %cst_49 : f32 to vector<2x32xf32>
    %204 = arith.addf %203, %202 : vector<2x32xf32>
    %205 = arith.divf %203, %204 : vector<2x32xf32>
    %206 = vector.extract_strided_slice %193 {offsets = [0, 32], sizes = [2, 32], strides = [1, 1]} : vector<2x96xf32> to vector<2x32xf32>
    %207 = vector.extract_strided_slice %197 {offsets = [0, 32], sizes = [2, 32], strides = [1, 1]} : vector<2x96xf32> to vector<2x32xf32>
    %208 = arith.addf %206, %207 : vector<2x32xf32>
    %209 = arith.negf %208 : vector<2x32xf32>
    %210 = math.exp %209 : vector<2x32xf32>
    %cst_50 = arith.constant 1.000000e+00 : f32
    %211 = vector.broadcast %cst_50 : f32 to vector<2x32xf32>
    %212 = arith.addf %211, %210 : vector<2x32xf32>
    %213 = arith.divf %211, %212 : vector<2x32xf32>
    %214 = vector.extract_strided_slice %193 {offsets = [0, 64], sizes = [2, 32], strides = [1, 1]} : vector<2x96xf32> to vector<2x32xf32>
    %215 = vector.extract_strided_slice %197 {offsets = [0, 64], sizes = [2, 32], strides = [1, 1]} : vector<2x96xf32> to vector<2x32xf32>
    %216 = arith.mulf %205, %215 : vector<2x32xf32>
    %217 = arith.addf %214, %216 : vector<2x32xf32>
    %218 = math.tanh %217 : vector<2x32xf32>
    %cst_51 = arith.constant 1.000000e+00 : f32
    %219 = vector.broadcast %cst_51 : f32 to vector<2x32xf32>
    %220 = arith.subf %219, %213 : vector<2x32xf32>
    %221 = arith.mulf %220, %218 : vector<2x32xf32>
    %222 = arith.mulf %213, %186 : vector<2x32xf32>
    %223 = arith.addf %221, %222 : vector<2x32xf32>
    %224 = arith.index_cast %c5_i32 : i32 to index
    %c0_52 = arith.constant 0 : index
    %c0_53 = arith.constant 0 : index
    %225 = vector.load %arg5[%224, %c0_52, %c0_53] : memref<8x2x32xf32, #tpu.memory_space<vmem>>, vector<1x2x32xf32>
    %226 = vector.shape_cast %225 : vector<1x2x32xf32> to vector<2x32xf32>
    %227 = vector.shape_cast %223 : vector<2x32xf32> to vector<1x2x32xf32>
    tpu.vector_store %arg5[%224, %c0_52, %c0_53], %227 {strides = array<i32>} : memref<8x2x32xf32, #tpu.memory_space<vmem>>, vector<1x2x32xf32>,
    %c6_i32 = arith.constant 6 : i32
    %228 = arith.index_cast %c6_i32 : i32 to index
    %c0_54 = arith.constant 0 : index
    %c0_55 = arith.constant 0 : index
    %229 = vector.load %arg1[%228, %c0_54, %c0_55] : memref<8x2x96xf32, #tpu.memory_space<vmem>>, vector<1x2x96xf32>
    %230 = vector.shape_cast %229 : vector<1x2x96xf32> to vector<2x96xf32>
    %231 = arith.truncf %223 : vector<2x32xf32> to vector<2x32xbf16>
    %cst_56 = arith.constant dense<0.000000e+00> : vector<2x96xf32>
    %232 = tpu.matmul %231, %3, %cst_56 {dimension_numbers = #tpu.dot_dimension_numbers<[1], [0], [0], [1], [0, 0, 1, 1], [], []>} : vector<2x32xbf16>, vector<32x96xbf16>, vector<2x96xf32> -> vector<2x96xf32>
    %233 = vector.broadcast %4 : vector<1x96xf32> to vector<2x96xf32>
    %234 = arith.addf %232, %233 : vector<2x96xf32>
    %235 = vector.extract_strided_slice %230 {offsets = [0, 0], sizes = [2, 32], strides = [1, 1]} : vector<2x96xf32> to vector<2x32xf32>
    %236 = vector.extract_strided_slice %234 {offsets = [0, 0], sizes = [2, 32], strides = [1, 1]} : vector<2x96xf32> to vector<2x32xf32>
    %237 = arith.addf %235, %236 : vector<2x32xf32>
    %238 = arith.negf %237 : vector<2x32xf32>
    %239 = math.exp %238 : vector<2x32xf32>
    %cst_57 = arith.constant 1.000000e+00 : f32
    %240 = vector.broadcast %cst_57 : f32 to vector<2x32xf32>
    %241 = arith.addf %240, %239 : vector<2x32xf32>
    %242 = arith.divf %240, %241 : vector<2x32xf32>
    %243 = vector.extract_strided_slice %230 {offsets = [0, 32], sizes = [2, 32], strides = [1, 1]} : vector<2x96xf32> to vector<2x32xf32>
    %244 = vector.extract_strided_slice %234 {offsets = [0, 32], sizes = [2, 32], strides = [1, 1]} : vector<2x96xf32> to vector<2x32xf32>
    %245 = arith.addf %243, %244 : vector<2x32xf32>
    %246 = arith.negf %245 : vector<2x32xf32>
    %247 = math.exp %246 : vector<2x32xf32>
    %cst_58 = arith.constant 1.000000e+00 : f32
    %248 = vector.broadcast %cst_58 : f32 to vector<2x32xf32>
    %249 = arith.addf %248, %247 : vector<2x32xf32>
    %250 = arith.divf %248, %249 : vector<2x32xf32>
    %251 = vector.extract_strided_slice %230 {offsets = [0, 64], sizes = [2, 32], strides = [1, 1]} : vector<2x96xf32> to vector<2x32xf32>
    %252 = vector.extract_strided_slice %234 {offsets = [0, 64], sizes = [2, 32], strides = [1, 1]} : vector<2x96xf32> to vector<2x32xf32>
    %253 = arith.mulf %242, %252 : vector<2x32xf32>
    %254 = arith.addf %251, %253 : vector<2x32xf32>
    %255 = math.tanh %254 : vector<2x32xf32>
    %cst_59 = arith.constant 1.000000e+00 : f32
    %256 = vector.broadcast %cst_59 : f32 to vector<2x32xf32>
    %257 = arith.subf %256, %250 : vector<2x32xf32>
    %258 = arith.mulf %257, %255 : vector<2x32xf32>
    %259 = arith.mulf %250, %223 : vector<2x32xf32>
    %260 = arith.addf %258, %259 : vector<2x32xf32>
    %261 = arith.index_cast %c6_i32 : i32 to index
    %c0_60 = arith.constant 0 : index
    %c0_61 = arith.constant 0 : index
    %262 = vector.load %arg5[%261, %c0_60, %c0_61] : memref<8x2x32xf32, #tpu.memory_space<vmem>>, vector<1x2x32xf32>
    %263 = vector.shape_cast %262 : vector<1x2x32xf32> to vector<2x32xf32>
    %264 = vector.shape_cast %260 : vector<2x32xf32> to vector<1x2x32xf32>
    tpu.vector_store %arg5[%261, %c0_60, %c0_61], %264 {strides = array<i32>} : memref<8x2x32xf32, #tpu.memory_space<vmem>>, vector<1x2x32xf32>,
    %c7_i32 = arith.constant 7 : i32
    %265 = arith.index_cast %c7_i32 : i32 to index
    %c0_62 = arith.constant 0 : index
    %c0_63 = arith.constant 0 : index
    %266 = vector.load %arg1[%265, %c0_62, %c0_63] : memref<8x2x96xf32, #tpu.memory_space<vmem>>, vector<1x2x96xf32>
    %267 = vector.shape_cast %266 : vector<1x2x96xf32> to vector<2x96xf32>
    %268 = arith.truncf %260 : vector<2x32xf32> to vector<2x32xbf16>
    %cst_64 = arith.constant dense<0.000000e+00> : vector<2x96xf32>
    %269 = tpu.matmul %268, %3, %cst_64 {dimension_numbers = #tpu.dot_dimension_numbers<[1], [0], [0], [1], [0, 0, 1, 1], [], []>} : vector<2x32xbf16>, vector<32x96xbf16>, vector<2x96xf32> -> vector<2x96xf32>
    %270 = vector.broadcast %4 : vector<1x96xf32> to vector<2x96xf32>
    %271 = arith.addf %269, %270 : vector<2x96xf32>
    %272 = vector.extract_strided_slice %267 {offsets = [0, 0], sizes = [2, 32], strides = [1, 1]} : vector<2x96xf32> to vector<2x32xf32>
    %273 = vector.extract_strided_slice %271 {offsets = [0, 0], sizes = [2, 32], strides = [1, 1]} : vector<2x96xf32> to vector<2x32xf32>
    %274 = arith.addf %272, %273 : vector<2x32xf32>
    %275 = arith.negf %274 : vector<2x32xf32>
    %276 = math.exp %275 : vector<2x32xf32>
    %cst_65 = arith.constant 1.000000e+00 : f32
    %277 = vector.broadcast %cst_65 : f32 to vector<2x32xf32>
    %278 = arith.addf %277, %276 : vector<2x32xf32>
    %279 = arith.divf %277, %278 : vector<2x32xf32>
    %280 = vector.extract_strided_slice %267 {offsets = [0, 32], sizes = [2, 32], strides = [1, 1]} : vector<2x96xf32> to vector<2x32xf32>
    %281 = vector.extract_strided_slice %271 {offsets = [0, 32], sizes = [2, 32], strides = [1, 1]} : vector<2x96xf32> to vector<2x32xf32>
    %282 = arith.addf %280, %281 : vector<2x32xf32>
    %283 = arith.negf %282 : vector<2x32xf32>
    %284 = math.exp %283 : vector<2x32xf32>
    %cst_66 = arith.constant 1.000000e+00 : f32
    %285 = vector.broadcast %cst_66 : f32 to vector<2x32xf32>
    %286 = arith.addf %285, %284 : vector<2x32xf32>
    %287 = arith.divf %285, %286 : vector<2x32xf32>
    %288 = vector.extract_strided_slice %267 {offsets = [0, 64], sizes = [2, 32], strides = [1, 1]} : vector<2x96xf32> to vector<2x32xf32>
    %289 = vector.extract_strided_slice %271 {offsets = [0, 64], sizes = [2, 32], strides = [1, 1]} : vector<2x96xf32> to vector<2x32xf32>
    %290 = arith.mulf %279, %289 : vector<2x32xf32>
    %291 = arith.addf %288, %290 : vector<2x32xf32>
    %292 = math.tanh %291 : vector<2x32xf32>
    %cst_67 = arith.constant 1.000000e+00 : f32
    %293 = vector.broadcast %cst_67 : f32 to vector<2x32xf32>
    %294 = arith.subf %293, %287 : vector<2x32xf32>
    %295 = arith.mulf %294, %292 : vector<2x32xf32>
    %296 = arith.mulf %287, %260 : vector<2x32xf32>
    %297 = arith.addf %295, %296 : vector<2x32xf32>
    %298 = arith.index_cast %c7_i32 : i32 to index
    %c0_68 = arith.constant 0 : index
    %c0_69 = arith.constant 0 : index
    %299 = vector.load %arg5[%298, %c0_68, %c0_69] : memref<8x2x32xf32, #tpu.memory_space<vmem>>, vector<1x2x32xf32>
    %300 = vector.shape_cast %299 : vector<1x2x32xf32> to vector<2x32xf32>
    %301 = vector.shape_cast %297 : vector<2x32xf32> to vector<1x2x32xf32>
    tpu.vector_store %arg5[%298, %c0_68, %c0_69], %301 {strides = array<i32>} : memref<8x2x32xf32, #tpu.memory_space<vmem>>, vector<1x2x32xf32>,
    %c8_i32 = arith.constant 8 : i32
    %c0_70 = arith.constant 0 : index
    %c0_71 = arith.constant 0 : index
    %302 = vector.load %arg7[%c0_70, %c0_71] : memref<2x32xf32, #tpu.memory_space<vmem>>, vector<2x32xf32>
    tpu.vector_store %arg7[%c0_70, %c0_71], %297 {strides = array<i32>} : memref<2x32xf32, #tpu.memory_space<vmem>>, vector<2x32xf32>,
    %c1_i32_72 = arith.constant 1 : i32
    %303 = arith.cmpi eq, %arg0, %c1_i32_72 : i32
    %304 = arith.extui %303 : i1 to i32
    %c0_i32_73 = arith.constant 0 : i32
    %305 = arith.cmpi ne, %304, %c0_i32_73 : i32
    scf.if %305 {
      %c0_74 = arith.constant 0 : index
      %c0_75 = arith.constant 0 : index
      %306 = vector.load %arg6[%c0_74, %c0_75] : memref<2x32xf32, #tpu.memory_space<vmem>>, vector<2x32xf32>
      tpu.vector_store %arg6[%c0_74, %c0_75], %297 {strides = array<i32>} : memref<2x32xf32, #tpu.memory_space<vmem>>, vector<2x32xf32>,
    } else {
    }
    return
  }
  func.func @transform_0(%arg0: i32) -> (i32, i32, i32) {
    %c0_i32 = arith.constant 0 : i32
    %c0_i32_0 = arith.constant 0 : i32
    %c0_i32_1 = arith.constant 0 : i32
    return %arg0, %c0_i32, %c0_i32_0 : i32, i32, i32
  }
  func.func @transform_1(%arg0: i32) -> (i32, i32) {
    %c0_i32 = arith.constant 0 : i32
    %c0_i32_0 = arith.constant 0 : i32
    %c0_i32_1 = arith.constant 0 : i32
    return %c0_i32, %c0_i32_0 : i32, i32
  }
  func.func @transform_2(%arg0: i32) -> (i32, i32) {
    %c0_i32 = arith.constant 0 : i32
    %c0_i32_0 = arith.constant 0 : i32
    %c0_i32_1 = arith.constant 0 : i32
    return %c0_i32, %c0_i32_0 : i32, i32
  }
  func.func @transform_3(%arg0: i32) -> (i32, i32) {
    %c0_i32 = arith.constant 0 : i32
    %c0_i32_0 = arith.constant 0 : i32
    %c0_i32_1 = arith.constant 0 : i32
    return %c0_i32, %c0_i32_0 : i32, i32
  }
  func.func @transform_4(%arg0: i32) -> (i32, i32, i32) {
    %c0_i32 = arith.constant 0 : i32
    %c0_i32_0 = arith.constant 0 : i32
    %c0_i32_1 = arith.constant 0 : i32
    return %arg0, %c0_i32, %c0_i32_0 : i32, i32, i32
  }
  func.func @transform_5(%arg0: i32) -> (i32, i32) {
    %c0_i32 = arith.constant 0 : i32
    %c0_i32_0 = arith.constant 0 : i32
    %c0_i32_1 = arith.constant 0 : i32
    return %c0_i32, %c0_i32_0 : i32, i32
  }
}

module attributes {stable_mosaic.version = 11 : i64} {
  func.func @_input_gates_kernel(%arg0: i32, %arg1: memref<32x48xf32, #tpu.memory_space<vmem>>, %arg2: memref<48x96xbf16, #tpu.memory_space<vmem>>, %arg3: memref<1x96xf32, #tpu.memory_space<vmem>>, %arg4: memref<32x96xf32, #tpu.memory_space<vmem>>) attributes {dimension_semantics = [#tpu.dimension_semantics<parallel>], iteration_bounds = array<i64: 1>, scalar_prefetch = 0 : i64, scratch_operands = 0 : i64, tpu.core_type = #tpu.core_type<tc>, window_params = [{transform_indices = @transform_0, window_bounds = array<i64: 32, 48>}, {pipeline_mode = #tpu.pipeline_mode<synchronous>, transform_indices = @transform_1, window_bounds = array<i64: 48, 96>}, {pipeline_mode = #tpu.pipeline_mode<synchronous>, transform_indices = @transform_2, window_bounds = array<i64: 1, 96>}, {transform_indices = @transform_3, window_bounds = array<i64: 32, 96>}]} {
    %c0 = arith.constant 0 : index
    %c0_0 = arith.constant 0 : index
    %0 = vector.load %arg1[%c0, %c0_0] : memref<32x48xf32, #tpu.memory_space<vmem>>, vector<32x48xf32>
    %1 = arith.truncf %0 : vector<32x48xf32> to vector<32x48xbf16>
    %c0_1 = arith.constant 0 : index
    %c0_2 = arith.constant 0 : index
    %2 = vector.load %arg2[%c0_1, %c0_2] : memref<48x96xbf16, #tpu.memory_space<vmem>>, vector<48x96xbf16>
    %cst = arith.constant dense<0.000000e+00> : vector<32x96xf32>
    %3 = tpu.matmul %1, %2, %cst {dimension_numbers = #tpu.dot_dimension_numbers<[1], [0], [0], [1], [0, 0, 1, 1], [], []>} : vector<32x48xbf16>, vector<48x96xbf16>, vector<32x96xf32> -> vector<32x96xf32>
    %c0_3 = arith.constant 0 : index
    %c0_4 = arith.constant 0 : index
    %4 = vector.load %arg3[%c0_3, %c0_4] : memref<1x96xf32, #tpu.memory_space<vmem>>, vector<1x96xf32>
    %5 = vector.broadcast %4 : vector<1x96xf32> to vector<32x96xf32>
    %6 = arith.addf %3, %5 : vector<32x96xf32>
    %c0_5 = arith.constant 0 : index
    %c0_6 = arith.constant 0 : index
    %7 = vector.load %arg4[%c0_5, %c0_6] : memref<32x96xf32, #tpu.memory_space<vmem>>, vector<32x96xf32>
    tpu.vector_store %arg4[%c0_5, %c0_6], %6 {strides = array<i32>} : memref<32x96xf32, #tpu.memory_space<vmem>>, vector<32x96xf32>,
    return
  }
  func.func @transform_0(%arg0: i32) -> (i32, i32) {
    %c0_i32 = arith.constant 0 : i32
    %c0_i32_0 = arith.constant 0 : i32
    return %arg0, %c0_i32 : i32, i32
  }
  func.func @transform_1(%arg0: i32) -> (i32, i32) {
    %c0_i32 = arith.constant 0 : i32
    %c0_i32_0 = arith.constant 0 : i32
    %c0_i32_1 = arith.constant 0 : i32
    return %c0_i32, %c0_i32_0 : i32, i32
  }
  func.func @transform_2(%arg0: i32) -> (i32, i32) {
    %c0_i32 = arith.constant 0 : i32
    %c0_i32_0 = arith.constant 0 : i32
    %c0_i32_1 = arith.constant 0 : i32
    return %c0_i32, %c0_i32_0 : i32, i32
  }
  func.func @transform_3(%arg0: i32) -> (i32, i32) {
    %c0_i32 = arith.constant 0 : i32
    %c0_i32_0 = arith.constant 0 : i32
    return %arg0, %c0_i32 : i32, i32
  }
}

module attributes {stable_mosaic.version = 11 : i64} {
  func.func @_proj_logsoftmax_kernel(%arg0: i32, %arg1: memref<32x32xf32, #tpu.memory_space<vmem>>, %arg2: memref<32x32xbf16, #tpu.memory_space<vmem>>, %arg3: memref<1x32xf32, #tpu.memory_space<vmem>>, %arg4: memref<32x32xf32, #tpu.memory_space<vmem>>) attributes {dimension_semantics = [#tpu.dimension_semantics<parallel>], iteration_bounds = array<i64: 1>, scalar_prefetch = 0 : i64, scratch_operands = 0 : i64, tpu.core_type = #tpu.core_type<tc>, window_params = [{transform_indices = @transform_0, window_bounds = array<i64: 32, 32>}, {pipeline_mode = #tpu.pipeline_mode<synchronous>, transform_indices = @transform_1, window_bounds = array<i64: 32, 32>}, {pipeline_mode = #tpu.pipeline_mode<synchronous>, transform_indices = @transform_2, window_bounds = array<i64: 1, 32>}, {transform_indices = @transform_3, window_bounds = array<i64: 32, 32>}]} {
    %c0 = arith.constant 0 : index
    %c0_0 = arith.constant 0 : index
    %0 = vector.load %arg1[%c0, %c0_0] : memref<32x32xf32, #tpu.memory_space<vmem>>, vector<32x32xf32>
    %1 = arith.truncf %0 : vector<32x32xf32> to vector<32x32xbf16>
    %c0_1 = arith.constant 0 : index
    %c0_2 = arith.constant 0 : index
    %2 = vector.load %arg2[%c0_1, %c0_2] : memref<32x32xbf16, #tpu.memory_space<vmem>>, vector<32x32xbf16>
    %cst = arith.constant dense<0.000000e+00> : vector<32x32xf32>
    %3 = tpu.matmul %1, %2, %cst {dimension_numbers = #tpu.dot_dimension_numbers<[1], [0], [0], [1], [0, 0, 1, 1], [], []>} : vector<32x32xbf16>, vector<32x32xbf16>, vector<32x32xf32> -> vector<32x32xf32>
    %c0_3 = arith.constant 0 : index
    %c0_4 = arith.constant 0 : index
    %4 = vector.load %arg3[%c0_3, %c0_4] : memref<1x32xf32, #tpu.memory_space<vmem>>, vector<1x32xf32>
    %5 = vector.broadcast %4 : vector<1x32xf32> to vector<32x32xf32>
    %6 = arith.addf %3, %5 : vector<32x32xf32>
    %cst_5 = arith.constant dense<0xFF800000> : vector<32xf32>
    %7 = vector.multi_reduction <maximumf>, %6, %cst_5 [1] : vector<32x32xf32> to vector<32xf32>
    %8 = vector.shape_cast %7 : vector<32xf32> to vector<32x1xf32>
    %9 = vector.broadcast %8 : vector<32x1xf32> to vector<32x32xf32>
    %10 = arith.subf %6, %9 : vector<32x32xf32>
    %11 = math.exp %10 : vector<32x32xf32>
    %cst_6 = arith.constant dense<0.000000e+00> : vector<32xf32>
    %12 = vector.multi_reduction <add>, %11, %cst_6 [1] : vector<32x32xf32> to vector<32xf32>
    %13 = vector.shape_cast %12 : vector<32xf32> to vector<32x1xf32>
    %14 = math.log %13 : vector<32x1xf32>
    %15 = vector.broadcast %14 : vector<32x1xf32> to vector<32x32xf32>
    %16 = arith.subf %10, %15 : vector<32x32xf32>
    %c0_7 = arith.constant 0 : index
    %c0_8 = arith.constant 0 : index
    %17 = vector.load %arg4[%c0_7, %c0_8] : memref<32x32xf32, #tpu.memory_space<vmem>>, vector<32x32xf32>
    tpu.vector_store %arg4[%c0_7, %c0_8], %16 {strides = array<i32>} : memref<32x32xf32, #tpu.memory_space<vmem>>, vector<32x32xf32>,
    return
  }
  func.func @transform_0(%arg0: i32) -> (i32, i32) {
    %c0_i32 = arith.constant 0 : i32
    %c0_i32_0 = arith.constant 0 : i32
    return %arg0, %c0_i32 : i32, i32
  }
  func.func @transform_1(%arg0: i32) -> (i32, i32) {
    %c0_i32 = arith.constant 0 : i32
    %c0_i32_0 = arith.constant 0 : i32
    %c0_i32_1 = arith.constant 0 : i32
    return %c0_i32, %c0_i32_0 : i32, i32
  }
  func.func @transform_2(%arg0: i32) -> (i32, i32) {
    %c0_i32 = arith.constant 0 : i32
    %c0_i32_0 = arith.constant 0 : i32
    %c0_i32_1 = arith.constant 0 : i32
    return %c0_i32, %c0_i32_0 : i32, i32
  }
  func.func @transform_3(%arg0: i32) -> (i32, i32) {
    %c0_i32 = arith.constant 0 : i32
    %c0_i32_0 = arith.constant 0 : i32
    return %arg0, %c0_i32 : i32, i32
  }
}

</mosaic_0001>

<bundles_post_ra>
// kernel: decoder_forward.3
= control target key start
LH: loop header
LB: loop body
LE: loop exit
PB: predicated region body
PF: predicated region fallthrough
CT: control target
= control target key end

     0   :  { %vm49_vm0 = vcmask 392192   ;;  %vm75_vm1 = vcmask 785408   ;;  %s161_s1 = inlined_call_operand.vmem [shape: bf16[48,96], index: 1, kind: input, shape index: {}]   ;;  %s162_s2 = inlined_call_operand.vmem [shape: f32[1,96], index: 2, kind: input, shape index: {}]   ;;  %s163_s0 = inlined_call_operand.vmem [shape: f32[32,48], index: 0, kind: input, shape index: {}]   ;;  %s164_s3 = inlined_call_operand.vmem [shape: f32[32,96], index: 3, kind: output, shape index: {}]  }
   0x1   :  { %v100_v0 = vld [vmem:[%s161_s1 + $0x10] sm:$0xff]  ;;  %v99_v1 = vld [vmem:[%s161_s1 + $0x8] sm:$0xff]  ;;  %v98_v2 = vld [vmem:[%s161_s1] sm:$0xff] }
   0x2   :  { %61 = vmatpush.bf16.msra.mxu0 %v100_v0  ;;  %101 = vmatpush.bf16.msra.mxu1 %v100_v0  ;;  %v15_v3 = vld [vmem:[%s163_s0] sm:$0xff]  ;;  %v16_v4 = vld [vmem:[%s163_s0 + $0x8] sm:$0xff]  ;;  %v17_v5 = vld [vmem:[%s163_s0 + $0x10] sm:$0xff] }
   0x3   :  { %v18_v6 = vld [vmem:[%s163_s0 + $0x18] sm:$0xff]  ;;  %v19_v7 = vpack.c.bf16 %v16_v4, %v15_v3  ;;  %v104_v9 = vld [vmem:[%s162_s2] ss:$0 sm:$0xff] }
   0x4   :  { %v20_v8 = vpack.c.bf16 %v18_v6, %v17_v5 }
   0x6   :  { %62 = vmatpush.bf16.msra.mxu0 %v99_v1  ;;  %102 = vmatpush.bf16.msra.mxu1 %v99_v1 }
   0xa   :  { %63 = vmatpush.bf16.msra.mxu0 %v98_v2  ;;  %103 = vmatpush.bf16.msra.mxu1 %v98_v2 }
   0xd   :  { %96 = vmatmul.msk.bf16.vlgmr.msra.gmra.mxu0 %vm49_vm0, %v19_v7  ;;  %97 = vmatmul.msk.bf16.vlgmr.msra.gmra.mxu1 %vm49_vm0, %v20_v8 }
  0x8a   :  { %v65_v10 = vpop.f32.mrf.mxu0  ;;  %v70_v11 = vpop.f32.mrf.mxu1 }
  0x8b   :  { %v66_v12 = vadd.f32 %v104_v9, %v65_v10  ;;  %v71_v13 = vadd.f32 %v104_v9, %v70_v11 }
  0x8d   :  { %76 = vst.msk [vmem:[%s164_s3] sm:$0xff] %vm75_vm1, %v66_v12 }
  0x8e   :  { %78 = vst.msk [vmem:[%s164_s3 + $0x10] sm:$0xff] %vm75_vm1, %v71_v13 }
  0x92   :  { %v67_v14 = vpop.f32.mrf.mxu0  ;;  %v72_v15 = vpop.f32.mrf.mxu1 }
  0x93   :  { %v68_v16 = vadd.f32 %v104_v9, %v67_v14  ;;  %v73_v17 = vadd.f32 %v104_v9, %v72_v15 }
  0x95   :  { %77 = vst.msk [vmem:[%s164_s3 + $0x8] sm:$0xff] %vm75_vm1, %v68_v16 }
  0x96   :  { %79 = vst.msk [vmem:[%s164_s3 + $0x18] sm:$0xff] %vm75_vm1, %v73_v17 }

// kernel: decoder_forward.5
= control target key start
LH: loop header
LB: loop body
LE: loop exit
PB: predicated region body
PF: predicated region fallthrough
CT: control target
= control target key end

     0   :  { %vm41_vm0 = vcmask 261120   ;;  %s221_s1 = inlined_call_operand.vmem [shape: bf16[32,32], index: 1, kind: input, shape index: {}]   ;;  %s222_s0 = inlined_call_operand.vmem [shape: f32[32,32], index: 0, kind: input, shape index: {}]   ;;  %s223_s2 = inlined_call_operand.vmem [shape: f32[1,32], index: 2, kind: input, shape index: {}]   ;;  %s224_s3 = inlined_call_operand.vmem [shape: f32[32,32], index: 3, kind: output, shape index: {}]  }
   0x1   :  { %v134_v0 = vld [vmem:[%s221_s1 + $0x8] sm:$0xff]  ;;  %v133_v1 = vld [vmem:[%s221_s1] sm:$0xff]  ;;  %v17_v4 = vld [vmem:[%s222_s0 + $0x10] sm:$0xff] }
   0x2   :  { %v15_v2 = vld [vmem:[%s222_s0] sm:$0xff]  ;;  %v16_v3 = vld [vmem:[%s222_s0 + $0x8] sm:$0xff]  ;;  %54 = vmatpush.bf16.msra.mxu0 %v134_v0  ;;  %135 = vmatpush.bf16.msra.mxu1 %v134_v0  ;;  %v18_v5 = vld [vmem:[%s222_s0 + $0x18] sm:$0xff] }
   0x3   :  { %v19_v6 = vpack.c.bf16 %v16_v3, %v15_v2  ;;  %v20_v7 = vpack.c.bf16 %v18_v5, %v17_v4  ;;  %v137_v8 = vld [vmem:[%s223_s2] ss:$0 sm:$0xff] }
   0x6   :  { %55 = vmatpush.bf16.msra.mxu0 %v133_v1  ;;  %136 = vmatpush.bf16.msra.mxu1 %v133_v1 }
   0x9   :  { %131 = vmatmul.msk.bf16.vlgmr.msra.gmra.mxu0 %vm41_vm0, %v19_v6  ;;  %132 = vmatmul.msk.bf16.vlgmr.msra.gmra.mxu1 %vm41_vm0, %v20_v7 }
  0x86   :  { %v57_v9 = vpop.f32.mrf.mxu0  ;;  %v62_v10 = vpop.f32.mrf.mxu1 }
  0x87   :  { %v58_v11 = vadd.f32 %v137_v8, %v57_v9  ;;  %v63_v12 = vadd.f32 %v137_v8, %v62_v10 }
  0x89   :  { %v73_v13 = vsel %vm41_vm0, %v63_v12, -inf  ;;  %v67_v14 = vsel %vm41_vm0, %v58_v11, -inf }
  0x8a   :  { %74 = vmax.xlane.f32.xlu1 %v73_v13  ;;  %68 = vmax.xlane.f32.xlu0 %v67_v14 }
  0x8e   :  { %v59_v15 = vpop.f32.mrf.mxu0  ;;  %v64_v16 = vpop.f32.mrf.mxu1 }
  0x8f   :  { %v60_v17 = vadd.f32 %v137_v8, %v59_v15  ;;  %v65_v18 = vadd.f32 %v137_v8, %v64_v16 }
  0x91   :  { %v76_v19 = vsel %vm41_vm0, %v65_v18, -inf  ;;  %v70_v20 = vsel %vm41_vm0, %v60_v17, -inf }
  0x92   :  { %77 = vmax.xlane.f32.xlu1 %v76_v19  ;;  %71 = vmax.xlane.f32.xlu0 %v70_v20 }
  0xfd   :  { %v75_v21 = vpop.xlane.xlu1 %74  ;;  %v69_v22 = vpop.xlane.xlu0 %68 }
  0xfe   :  { %v81_v23 = vsub.f32 %v63_v12, %v75_v21  ;;  %v79_v24 = vsub.f32 %v58_v11, %v69_v22 }
 0x100   :  { %v87_v25 = vmul.f32 1.442695, %v81_v23  ;;  %v83_v26 = vmul.f32 1.442695, %v79_v24 }
 0x102   :  { %138 = vpow2.f32 %v87_v25 }
 0x103   :  { %140 = vpow2.f32 %v83_v26 }
 0x105   :  { %v78_v27 = vpop.xlane.xlu1 %77  ;;  %v72_v28 = vpop.xlane.xlu0 %71 }
 0x106   :  { %v82_v29 = vsub.f32 %v65_v18, %v78_v27  ;;  %v80_v30 = vsub.f32 %v60_v17, %v72_v28 }
 0x108   :  { %v139_v31 = vpop.eup %138  ;;  %v89_v32 = vmul.f32 1.442695, %v82_v29  ;;  %v85_v33 = vmul.f32 1.442695, %v80_v30 }
 0x109   :  { %v141_v34 = vpop.eup %140  ;;  %v97_v35 = vsel %vm41_vm0, %v139_v31, 0.0 }
 0x10a   :  { %142 = vpow2.f32 %v89_v32  ;;  %98 = vadd.xlane.f32.xlu0 %v97_v35  ;;  %v91_v36 = vsel %vm41_vm0, %v141_v34, 0.0 }
 0x10b   :  { %144 = vpow2.f32 %v85_v33  ;;  %92 = vadd.xlane.f32.xlu2 %v91_v36 }
 0x110   :  { %v143_v37 = vpop.eup %142 }
 0x111   :  { %v145_v38 = vpop.eup %144  ;;  %v100_v39 = vsel %vm41_vm0, %v143_v37, 0.0 }
 0x112   :  { %101 = vadd.xlane.f32.xlu1 %v100_v39  ;;  %v94_v40 = vsel %vm41_vm0, %v145_v38, 0.0 }
 0x113   :  { %95 = vadd.xlane.f32.xlu2 %v94_v40 }
 0x17d   :  { %v99_v41 = vpop.xlane.xlu0 %98 }
 0x17e   :  { %v93_v42 = vpop.xlane.xlu2 %92  ;;  %146 = vlog2.f32 %v99_v41 }
 0x17f   :  { %148 = vlog2.f32 %v93_v42 }
 0x184   :  { %v147_v43 = vpop.eup %146 }
 0x185   :  { %v149_v44 = vpop.eup %148  ;;  %v108_v45 = vmul.f32 0.6931472, %v147_v43  ;;  %v102_v46 = vpop.xlane.xlu1 %101 }
 0x186   :  { %v104_v47 = vmul.f32 0.6931472, %v149_v44  ;;  %150 = vlog2.f32 %v102_v46  ;;  %v96_v48 = vpop.xlane.xlu2 %95 }
 0x187   :  { %v113_v49 = vsub.f32 %v81_v23, %v108_v45  ;;  %152 = vlog2.f32 %v96_v48 }
 0x188   :  { %v111_v50 = vsub.f32 %v79_v24, %v104_v47 }
 0x189   :  { %117 = vst.msk [vmem:[%s224_s3 + $0x10] sm:$0xff] %vm41_vm0, %v113_v49 }
 0x18a   :  { %115 = vst.msk [vmem:[%s224_s3] sm:$0xff] %vm41_vm0, %v111_v50 }
 0x18c   :  { %v151_v51 = vpop.eup %150 }
 0x18d   :  { %v153_v52 = vpop.eup %152  ;;  %v110_v53 = vmul.f32 0.6931472, %v151_v51 }
 0x18e   :  { %v106_v54 = vmul.f32 0.6931472, %v153_v52 }
 0x18f   :  { %v114_v55 = vsub.f32 %v82_v29, %v110_v53 }
 0x190   :  { %v112_v56 = vsub.f32 %v80_v30, %v106_v54 }
 0x191   :  { %118 = vst.msk [vmem:[%s224_s3 + $0x18] sm:$0xff] %vm41_vm0, %v114_v55 }
 0x192   :  { %116 = vst.msk [vmem:[%s224_s3 + $0x8] sm:$0xff] %vm41_vm0, %v112_v56 }

// kernel: decoder_forward.4
= control target key start
LH: loop header
LB: loop body
LE: loop exit
PB: predicated region body
PF: predicated region fallthrough
CT: control target
= control target key end

     0   :  { %11 = vsyncpa [#allocation4], 0  ;;  %s1077_s18 = smov 0   ;;  %s1238_s0 = inlined_call_operand.vmem [shape: f32[16,2,96], index: 0, kind: input, shape index: {}]   ;;  %s1239_s1 = inlined_call_operand.vmem [shape: f32[2,32], index: 1, kind: input, shape index: {}]   ;;  %s1240_s2 = inlined_call_operand.vmem [shape: bf16[32,96], index: 2, kind: input, shape index: {}]   ;;  %s1241_s3 = inlined_call_operand.vmem [shape: f32[1,96], index: 3, kind: input, shape index: {}]   ;;  %s1242_s4 = inlined_call_operand.vmem [shape: f32[16,2,32], index: 4, kind: output, shape index: {0}]   ;;  %s1243_s5 = inlined_call_operand.hbm [shape: f32[2,32], index: 5, kind: output, shape index: {1}]  }
   0x1 LB: > { %s1083_s19 = sadd.s32 4294967295, %s1041_s18   ;;  %p885_p0 = scmp.ge.s32.totalorder %s1041_s18, 1  ;;  %s1041_s18 = sphi %s1077_s18, %s17_s18  }
   0x2   : > { %p187_p1 = scmp.lt.s32.totalorder %s1041_s18, 3 }
   0x4   : > { %p188_p2 = pnand %p885_p0, %p187_p1 }
   0x5   : > { %s886_s20 = sshll.u32 (!%p188_p2), %s1083_s19, 3  ;;  %p890_p4 = scmp.ne.s32.totalorder (!%p188_p2), %s1083_s19, 0 }
   0x6   : > { %191 = sbr.rel (%p188_p2) target bundleno = 4666 (0x123a), region = 36  ;;  %p216_p3 = scmp.lt.s32.totalorder (!%p188_p2), %s886_s20, 15 }
   0xb   : > { %s1245_s20 = smov (!%p216_p3, %s886_s20), 15  ;;  %231 = sbr.rel (%p890_p4) target bundleno = 18 (0x12), region = 40 }
   0xc   : > { %s887_s21 = sshll.u32 %s1245_s20, 1 }
   0xd   : > { %s1091_s24 = scalar_lea.vmem %s1238_s0, %s887_s21  ;;  %s1096_s27 = scalar_lea.vmem %s1242_s4, %s887_s21 }
  0x10   : > { %v232_v0 = vld [vmem:[%s1239_s1] sm:$0x3]  ;;  %vm233_vm0 = vcmask 254976  }
  0x11   : > { %234 = vst.msk [vmem:[#allocation2] sm:$0x3] %vm233_vm0, %v232_v0 }
  0x12 PF: > { %v935_v1 = vld [vmem:[%s1240_s2 + $0x8] sm:$0xff]  ;;  %v934_v2 = vld [vmem:[%s1240_s2] sm:$0xff]  ;;  %vm258_vm1 = vcmask 261120   ;;  %s1043_s11 = smov 64   ;;  %s1044_s12 = smov 96  }
  0x13   : > { %268 = vmatpush.bf16.msra.mxu0 %v935_v1  ;;  %339 = vmatpush.bf16.msra.mxu1 %v935_v1  ;;  %v1112_v5 = vld [vmem:[%s1241_s3] ss:$0 sm:$0xff]  ;;  %s1045_s13 = smov 32   ;;  %v901_v40 = vld [vmem:[%s1091_s24 + $0x2] sm:$0x3]  ;;  %p929_p5 = scmp.ne.s32.totalorder %s1083_s19, 1 }
  0x14   : > { %406 = vmatpush.bf16.msra.mxu2 %v935_v1  ;;  %473 = vmatpush.bf16.msra.mxu3 %v935_v1  ;;  %v241_v9 = vld [vmem:[%s1091_s24] sm:$0x3] }
  0x17   : > { %269 = vmatpush.bf16.msra.mxu0 %v934_v2  ;;  %340 = vmatpush.bf16.msra.mxu1 %v934_v2 }
  0x18   : > { %v240_v3 = vld [vmem:[#allocation2] sm:$0x3]  ;;  %407 = vmatpush.bf16.msra.mxu2 %v934_v2  ;;  %474 = vmatpush.bf16.msra.mxu3 %v934_v2 }
  0x19   : > { %v242_v4 = vpack.c.bf16 %v240_v3, %v240_v3 }
  0x1b   : > { %540 = vmatpush.bf16.msrb.mxu0 %v935_v1  ;;  %607 = vmatpush.bf16.msrb.mxu1 %v935_v1 }
  0x1c   : > { %899 = vmatmul.msk.bf16.vlgmr.msra.gmra.mxu0 %vm258_vm1, %v242_v4  ;;  %674 = vmatpush.bf16.msrb.mxu2 %v935_v1 }
  0x1d   : > { %741 = vmatpush.bf16.msrb.mxu3 %v935_v1 }
  0x1f   : > { %541 = vmatpush.bf16.msrb.mxu0 %v934_v2  ;;  %608 = vmatpush.bf16.msrb.mxu1 %v934_v2 }
  0x20   : > { %675 = vmatpush.bf16.msrb.mxu2 %v934_v2 }
  0x21   : > { %742 = vmatpush.bf16.msrb.mxu3 %v934_v2 }
  0x99   : > { %v271_v6 = vpop.f32.mrf.mxu0 }
  0x9a   : > { %v272_v7 = vadd.f32 %v1112_v5, %v271_v6 }
  0x9c   : > { %296 = vrot.lane.b32.xlu0 %v272_v7, %s1043_s11  ;;  %v275_v10 = vadd.f32 %v272_v7, %v241_v9  ;;  %v905_v7 = vld [vmem:[%s1091_s24 + $0x4] sm:$0x3] }
  0x9e   : > { %v900_v11 = vmul.f32 -1.442695, %v275_v10 }
  0xa0   : > { %955 = vpow2.f32 %v900_v11 }
  0xa1   : > { %v273_v8 = vpop.f32.mrf.mxu0 }
  0xa6   : > { %v956_v12 = vpop.eup %955 }
  0xa7   : > { %v279_v13 = vadd.f32 1.0, %v956_v12 }
  0xa9   : > { %957 = vrcp.f32 %v279_v13  ;;  %v291_v19 = vand.u32 2147483648, %v279_v13  ;;  %vm285_vm3 = vweird.f32 %v279_v13  ;;  %v289_v20 = vand.u32 2147483647, %v279_v13 }
  0xab   : > { %v292_v22 = vor.u32 1.1754944e-38, %v291_v19  ;;  %vm290_vm5 = vcmp.eq.f32.partialorder %v289_v20, 8.507059e+37 }
  0xaf   : > { %v958_v14 = vpop.eup %957 }
  0xb0   : > { %v281_v15 = vmul.f32 %v958_v14, %v279_v13  ;;  %vm286_vm2 = vweird.f32 %v958_v14 }
  0xb1   : > { %vm287_vm4 = vmor %vm285_vm3, %vm286_vm2 }
  0xb2   : > { %v282_v16 = vsub.f32 1.0, %v281_v15 }
  0xb4   : > { %v283_v17 = vmul.f32 %v958_v14, %v282_v16 }
  0xb6   : > { %v284_v18 = vadd.f32 %v958_v14, %v283_v17 }
  0xb8   : > { %v288_v21 = vsel %vm287_vm4, %v958_v14, %v284_v18 }
  0xb9   : > { %v293_v24 = vsel %vm290_vm5, %v292_v22, %v288_v21 }
  0xba   : > { %v306_v30 = vsub.f32 1.0, %v293_v24 }
 0x10e   : > { %v297_v23 = vpop.permute.xlu0 %296 }
 0x10f   : > { %v299_v25 = vmul.f32 %v297_v23, %v293_v24 }
 0x111   : > { %301 = vrot.lane.b32.xlu0 %v299_v25, %s1043_s11 }
 0x183   : > { %v302_v26 = vpop.permute.xlu0 %301 }
 0x184   : > { %v304_v27 = vadd.f32 %v302_v26, %v241_v9 }
 0x186   : > { %959 = vtanh.f32 %v304_v27 }
 0x18c   : > { %v960_v28 = vpop.eup %959 }
 0x18d   : > { %308 = vrot.lane.b32.xlu1 %v960_v28, %s1044_s12 }
 0x195   : > { %313 = vrot.lane.b32.xlu1 %v240_v3, %s1045_s13 }
 0x1ff   : > { %v309_v29 = vpop.permute.xlu1 %308 }
 0x200   : > { %v311_v32 = vmul.f32 %v309_v29, %v306_v30 }
 0x207   : > { %v314_v31 = vpop.permute.xlu1 %313 }
 0x208   : > { %v316_v33 = vmul.f32 %v314_v31, %v293_v24 }
 0x20a   : > { %v1119_v34 = vadd.f32 %v316_v33, %v311_v32 }
 0x20c   : > { %v326_v35 = vpack.c.bf16 %v1119_v34, %v1119_v34 }
 0x20e   : > { %328 = vrot.lane.b32.xlu2 %v326_v35, %s1044_s12 }
 0x268   : > { %v329_v36 = vpop.permute.xlu2 %328 }
 0x269   : > { %902 = vmatmul.msk.bf16.vlgmr.msra.gmra.mxu1 %vm258_vm1, %v329_v36 }
 0x2e6   : > { %v342_v37 = vpop.f32.mrf.mxu1 }
 0x2e7   : > { %v343_v38 = vadd.f32 %v1112_v5, %v342_v37 }
 0x2e9   : > { %367 = vrot.lane.b32.xlu2 %v343_v38, %s1043_s11  ;;  %v346_v41 = vadd.f32 %v901_v40, %v343_v38  ;;  %v909_v38 = vld [vmem:[%s1091_s24 + $0x6] sm:$0x3] }
 0x2eb   : > { %v903_v42 = vmul.f32 -1.442695, %v346_v41 }
 0x2ed   : > { %961 = vpow2.f32 %v903_v42 }
 0x2ee   : > { %v344_v39 = vpop.f32.mrf.mxu1 }
 0x2f3   : > { %v962_v43 = vpop.eup %961 }
 0x2f4   : > { %v350_v44 = vadd.f32 1.0, %v962_v43 }
 0x2f6   : > { %963 = vrcp.f32 %v350_v44  ;;  %v362_v50 = vand.u32 2147483648, %v350_v44  ;;  %vm356_vm7 = vweird.f32 %v350_v44  ;;  %v360_v51 = vand.u32 2147483647, %v350_v44 }
 0x2f8   : > { %v363_v53 = vor.u32 1.1754944e-38, %v362_v50  ;;  %vm361_vm9 = vcmp.eq.f32.partialorder %v360_v51, 8.507059e+37 }
 0x2fc   : > { %v964_v45 = vpop.eup %963 }
 0x2fd   : > { %v352_v46 = vmul.f32 %v964_v45, %v350_v44  ;;  %vm357_vm6 = vweird.f32 %v964_v45 }
 0x2fe   : > { %vm358_vm8 = vmor %vm356_vm7, %vm357_vm6 }
 0x2ff   : > { %v353_v47 = vsub.f32 1.0, %v352_v46 }
 0x301   : > { %v354_v48 = vmul.f32 %v964_v45, %v353_v47 }
 0x303   : > { %v355_v49 = vadd.f32 %v964_v45, %v354_v48 }
 0x305   : > { %v359_v52 = vsel %vm358_vm8, %v964_v45, %v355_v49 }
 0x306   : > { %v364_v55 = vsel %vm361_vm9, %v363_v53, %v359_v52 }
 0x307   : > { %v377_v60 = vsub.f32 1.0, %v364_v55  ;;  %v383_v62 = vmul.f32 %v364_v55, %v1119_v34 }
 0x343   : > { %v368_v54 = vpop.permute.xlu2 %367 }
 0x344   : > { %v370_v56 = vmul.f32 %v368_v54, %v364_v55 }
 0x346   : > { %372 = vrot.lane.b32.xlu0 %v370_v56, %s1043_s11 }
 0x3b8   : > { %v373_v57 = vpop.permute.xlu0 %372 }
 0x3b9   : > { %v375_v58 = vadd.f32 %v901_v40, %v373_v57 }
 0x3bb   : > { %965 = vtanh.f32 %v375_v58 }
 0x3c1   : > { %v966_v59 = vpop.eup %965 }
 0x3c2   : > { %379 = vrot.lane.b32.xlu1 %v966_v59, %s1044_s12 }
 0x434   : > { %v380_v61 = vpop.permute.xlu1 %379 }
 0x435   : > { %v382_v63 = vmul.f32 %v380_v61, %v377_v60 }
 0x437   : > { %v1131_v0 = vadd.f32 %v383_v62, %v382_v63 }
 0x439   : > { %v393_v1 = vpack.c.bf16 %v1131_v0, %v1131_v0 }
 0x43b   : > { %395 = vrot.lane.b32.xlu2 %v393_v1, %s1044_s12 }
 0x495   : > { %v396_v2 = vpop.permute.xlu2 %395 }
 0x496   : > { %906 = vmatmul.msk.bf16.vlgmr.msra.gmra.mxu2 %vm258_vm1, %v396_v2 }
 0x519   : > { %v409_v3 = vpop.f32.mrf.mxu2 }
 0x51a   : > { %v410_v4 = vadd.f32 %v1112_v5, %v409_v3 }
 0x51c   : > { %434 = vrot.lane.b32.xlu0 %v410_v4, %s1043_s11  ;;  %v413_v8 = vadd.f32 %v905_v7, %v410_v4 }
 0x51e   : > { %v907_v9 = vmul.f32 -1.442695, %v413_v8 }
 0x520   : > { %967 = vpow2.f32 %v907_v9 }
 0x521   : > { %v411_v6 = vpop.f32.mrf.mxu2 }
 0x522   : > { %v913_v6 = vld [vmem:[%s1091_s24 + $0x8] sm:$0x3] }
 0x526   : > { %v968_v10 = vpop.eup %967 }
 0x527   : > { %v417_v11 = vadd.f32 1.0, %v968_v10 }
 0x529   : > { %969 = vrcp.f32 %v417_v11  ;;  %v429_v17 = vand.u32 2147483648, %v417_v11  ;;  %vm423_vm11 = vweird.f32 %v417_v11  ;;  %v427_v18 = vand.u32 2147483647, %v417_v11 }
 0x52b   : > { %v430_v20 = vor.u32 1.1754944e-38, %v429_v17  ;;  %vm428_vm13 = vcmp.eq.f32.partialorder %v427_v18, 8.507059e+37 }
 0x52f   : > { %v970_v12 = vpop.eup %969 }
 0x530   : > { %v419_v13 = vmul.f32 %v970_v12, %v417_v11  ;;  %vm424_vm10 = vweird.f32 %v970_v12 }
 0x531   : > { %vm425_vm12 = vmor %vm423_vm11, %vm424_vm10 }
 0x532   : > { %v420_v14 = vsub.f32 1.0, %v419_v13 }
 0x534   : > { %v421_v15 = vmul.f32 %v970_v12, %v420_v14 }
 0x536   : > { %v422_v16 = vadd.f32 %v970_v12, %v421_v15 }
 0x538   : > { %v426_v19 = vsel %vm425_vm12, %v970_v12, %v422_v16 }
 0x539   : > { %v431_v22 = vsel %vm428_vm13, %v430_v20, %v426_v19 }
 0x53a   : > { %v444_v27 = vsub.f32 1.0, %v431_v22  ;;  %v450_v29 = vmul.f32 %v431_v22, %v1131_v0 }
 0x58e   : > { %v435_v21 = vpop.permute.xlu0 %434 }
 0x58f   : > { %v437_v23 = vmul.f32 %v435_v21, %v431_v22 }
 0x591   : > { %439 = vrot.lane.b32.xlu1 %v437_v23, %s1043_s11 }
 0x603   : > { %v440_v24 = vpop.permute.xlu1 %439 }
 0x604   : > { %v442_v25 = vadd.f32 %v905_v7, %v440_v24 }
 0x606   : > { %971 = vtanh.f32 %v442_v25 }
 0x60c   : > { %v972_v26 = vpop.eup %971 }
 0x60d   : > { %446 = vrot.lane.b32.xlu2 %v972_v26, %s1044_s12 }
 0x667   : > { %v447_v28 = vpop.permute.xlu2 %446 }
 0x668   : > { %v449_v30 = vmul.f32 %v447_v28, %v444_v27 }
 0x66a   : > { %v1143_v31 = vadd.f32 %v450_v29, %v449_v30 }
 0x66c   : > { %v460_v32 = vpack.c.bf16 %v1143_v31, %v1143_v31 }
 0x66e   : > { %462 = vrot.lane.b32.xlu0 %v460_v32, %s1044_s12 }
 0x6e0   : > { %v463_v33 = vpop.permute.xlu0 %462 }
 0x6e1   : > { %910 = vmatmul.msk.bf16.vlgmr.msra.gmra.mxu3 %vm258_vm1, %v463_v33 }
 0x764   : > { %v476_v35 = vpop.f32.mrf.mxu3 }
 0x765   : > { %v477_v36 = vadd.f32 %v1112_v5, %v476_v35 }
 0x767   : > { %501 = vrot.lane.b32.xlu1 %v477_v36, %s1043_s11  ;;  %v480_v39 = vadd.f32 %v909_v38, %v477_v36 }
 0x769   : > { %v911_v40 = vmul.f32 -1.442695, %v480_v39 }
 0x76b   : > { %973 = vpow2.f32 %v911_v40 }
 0x76c   : > { %v478_v37 = vpop.f32.mrf.mxu3 }
 0x771   : > { %v974_v41 = vpop.eup %973 }
 0x772   : > { %v484_v42 = vadd.f32 1.0, %v974_v41 }
 0x774   : > { %975 = vrcp.f32 %v484_v42  ;;  %v496_v48 = vand.u32 2147483648, %v484_v42  ;;  %vm490_vm15 = vweird.f32 %v484_v42  ;;  %v494_v49 = vand.u32 2147483647, %v484_v42 }
 0x776   : > { %v497_v51 = vor.u32 1.1754944e-38, %v496_v48  ;;  %vm495_vm2 = vcmp.eq.f32.partialorder %v494_v49, 8.507059e+37 }
 0x77a   : > { %v976_v43 = vpop.eup %975 }
 0x77b   : > { %v486_v44 = vmul.f32 %v976_v43, %v484_v42  ;;  %vm491_vm14 = vweird.f32 %v976_v43 }
 0x77c   : > { %vm492_vm0 = vmor %vm490_vm15, %vm491_vm14 }
 0x77d   : > { %v487_v45 = vsub.f32 1.0, %v486_v44 }
 0x77f   : > { %v488_v46 = vmul.f32 %v976_v43, %v487_v45 }
 0x781   : > { %v489_v47 = vadd.f32 %v976_v43, %v488_v46 }
 0x783   : > { %v493_v50 = vsel %vm492_vm0, %v976_v43, %v489_v47 }
 0x784   : > { %v498_v53 = vsel %vm495_vm2, %v497_v51, %v493_v50 }
 0x785   : > { %v511_v58 = vsub.f32 1.0, %v498_v53  ;;  %v517_v60 = vmul.f32 %v498_v53, %v1143_v31 }
 0x7d9   : > { %v502_v52 = vpop.permute.xlu1 %501 }
 0x7da   : > { %v504_v54 = vmul.f32 %v502_v52, %v498_v53 }
 0x7dc   : > { %506 = vrot.lane.b32.xlu2 %v504_v54, %s1043_s11 }
 0x836   : > { %v507_v55 = vpop.permute.xlu2 %506 }
 0x837   : > { %v509_v56 = vadd.f32 %v909_v38, %v507_v55  ;;  %v917_v38 = vld [vmem:[%s1091_s24 + $0xa] sm:$0x3] }
 0x839   : > { %977 = vtanh.f32 %v509_v56 }
 0x83f   : > { %v978_v57 = vpop.eup %977 }
 0x840   : > { %513 = vrot.lane.b32.xlu0 %v978_v57, %s1044_s12 }
 0x8b2   : > { %v514_v59 = vpop.permute.xlu0 %513 }
 0x8b3   : > { %v516_v61 = vmul.f32 %v514_v59, %v511_v58 }
 0x8b5   : > { %v1155_v62 = vadd.f32 %v517_v60, %v516_v61 }
 0x8b7   : > { %v527_v63 = vpack.c.bf16 %v1155_v62, %v1155_v62 }
 0x8b9   : > { %529 = vrot.lane.b32.xlu1 %v527_v63, %s1044_s12 }
 0x92b   : > { %v530_v1 = vpop.permute.xlu1 %529 }
 0x92c   : > { %914 = vmatmul.msk.bf16.vlgmr.msrb.gmra.mxu0 %vm258_vm1, %v530_v1 }
 0x9a9   : > { %v543_v2 = vpop.f32.mrf.mxu0 }
 0x9aa   : > { %v544_v3 = vadd.f32 %v1112_v5, %v543_v2 }
 0x9ac   : > { %568 = vrot.lane.b32.xlu2 %v544_v3, %s1043_s11  ;;  %v547_v7 = vadd.f32 %v913_v6, %v544_v3 }
 0x9ae   : > { %v915_v8 = vmul.f32 -1.442695, %v547_v7  ;;  %v921_v7 = vld [vmem:[%s1091_s24 + $0xc] sm:$0x3] }
 0x9b0   : > { %979 = vpow2.f32 %v915_v8 }
 0x9b1   : > { %v545_v4 = vpop.f32.mrf.mxu0 }
 0x9b6   : > { %v980_v9 = vpop.eup %979 }
 0x9b7   : > { %v551_v10 = vadd.f32 1.0, %v980_v9 }
 0x9b9   : > { %981 = vrcp.f32 %v551_v10  ;;  %v563_v16 = vand.u32 2147483648, %v551_v10  ;;  %vm557_vm4 = vweird.f32 %v551_v10  ;;  %v561_v17 = vand.u32 2147483647, %v551_v10 }
 0x9bb   : > { %v564_v19 = vor.u32 1.1754944e-38, %v563_v16  ;;  %vm562_vm6 = vcmp.eq.f32.partialorder %v561_v17, 8.507059e+37 }
 0x9bf   : > { %v982_v11 = vpop.eup %981 }
 0x9c0   : > { %v553_v12 = vmul.f32 %v982_v11, %v551_v10  ;;  %vm558_vm3 = vweird.f32 %v982_v11 }
 0x9c1   : > { %vm559_vm5 = vmor %vm557_vm4, %vm558_vm3  ;;  %vm322_vm3 = vcmask 254976  }
 0x9c2   : > { %v554_v13 = vsub.f32 1.0, %v553_v12 }
 0x9c4   : > { %v555_v14 = vmul.f32 %v982_v11, %v554_v13 }
 0x9c6   : > { %v556_v15 = vadd.f32 %v982_v11, %v555_v14 }
 0x9c8   : > { %v560_v18 = vsel %vm559_vm5, %v982_v11, %v556_v15 }
 0x9c9   : > { %v565_v21 = vsel %vm562_vm6, %v564_v19, %v560_v18 }
 0x9ca   : > { %v578_v26 = vsub.f32 1.0, %v565_v21  ;;  %v584_v28 = vmul.f32 %v565_v21, %v1155_v62 }
 0xa06   : > { %v569_v20 = vpop.permute.xlu2 %568 }
 0xa07   : > { %v571_v22 = vmul.f32 %v569_v20, %v565_v21 }
 0xa09   : > { %573 = vrot.lane.b32.xlu0 %v571_v22, %s1043_s11 }
 0xa7b   : > { %v574_v23 = vpop.permute.xlu0 %573 }
 0xa7c   : > { %v576_v24 = vadd.f32 %v913_v6, %v574_v23 }
 0xa7e   : > { %983 = vtanh.f32 %v576_v24 }
 0xa84   : > { %v984_v25 = vpop.eup %983 }
 0xa85   : > { %580 = vrot.lane.b32.xlu1 %v984_v25, %s1044_s12 }
 0xaf7   : > { %v581_v27 = vpop.permute.xlu1 %580 }
 0xaf8   : > { %v583_v29 = vmul.f32 %v581_v27, %v578_v26 }
 0xafa   : > { %v1167_v30 = vadd.f32 %v584_v28, %v583_v29 }
 0xafc   : > { %v594_v32 = vpack.c.bf16 %v1167_v30, %v1167_v30 }
 0xafe   : > { %596 = vrot.lane.b32.xlu2 %v594_v32, %s1044_s12 }
 0xb58   : > { %v597_v33 = vpop.permute.xlu2 %596 }
 0xb59   : > { %918 = vmatmul.msk.bf16.vlgmr.msrb.gmra.mxu1 %vm258_vm1, %v597_v33 }
 0xbd6   : > { %v610_v35 = vpop.f32.mrf.mxu1 }
 0xbd7   : > { %v611_v36 = vadd.f32 %v1112_v5, %v610_v35 }
 0xbd9   : > { %635 = vrot.lane.b32.xlu0 %v611_v36, %s1043_s11  ;;  %v614_v39 = vadd.f32 %v917_v38, %v611_v36 }
 0xbdb   : > { %v919_v40 = vmul.f32 -1.442695, %v614_v39 }
 0xbdd   : > { %985 = vpow2.f32 %v919_v40  ;;  %v925_v40 = vld [vmem:[%s1091_s24 + $0xe] sm:$0x3] }
 0xbde   : > { %v612_v37 = vpop.f32.mrf.mxu1 }
 0xbe3   : > { %v986_v41 = vpop.eup %985 }
 0xbe4   : > { %v618_v42 = vadd.f32 1.0, %v986_v41 }
 0xbe6   : > { %987 = vrcp.f32 %v618_v42  ;;  %v630_v48 = vand.u32 2147483648, %v618_v42  ;;  %vm624_vm8 = vweird.f32 %v618_v42  ;;  %v628_v49 = vand.u32 2147483647, %v618_v42 }
 0xbe8   : > { %v631_v51 = vor.u32 1.1754944e-38, %v630_v48  ;;  %vm629_vm10 = vcmp.eq.f32.partialorder %v628_v49, 8.507059e+37 }
 0xbec   : > { %v988_v43 = vpop.eup %987 }
 0xbed   : > { %v620_v44 = vmul.f32 %v988_v43, %v618_v42  ;;  %vm625_vm7 = vweird.f32 %v988_v43 }
 0xbee   : > { %vm626_vm9 = vmor %vm624_vm8, %vm625_vm7 }
 0xbef   : > { %v621_v45 = vsub.f32 1.0, %v620_v44 }
 0xbf1   : > { %v622_v46 = vmul.f32 %v988_v43, %v621_v45 }
 0xbf3   : > { %v623_v47 = vadd.f32 %v988_v43, %v622_v46 }
 0xbf5   : > { %v627_v50 = vsel %vm626_vm9, %v988_v43, %v623_v47 }
 0xbf6   : > { %v632_v53 = vsel %vm629_vm10, %v631_v51, %v627_v50 }
 0xbf7   : > { %v645_v58 = vsub.f32 1.0, %v632_v53  ;;  %v651_v60 = vmul.f32 %v632_v53, %v1167_v30 }
 0xc4b   : > { %v636_v52 = vpop.permute.xlu0 %635 }
 0xc4c   : > { %v638_v54 = vmul.f32 %v636_v52, %v632_v53 }
 0xc4e   : > { %640 = vrot.lane.b32.xlu1 %v638_v54, %s1043_s11 }
 0xcc0   : > { %v641_v55 = vpop.permute.xlu1 %640 }
 0xcc1   : > { %v643_v56 = vadd.f32 %v917_v38, %v641_v55 }
 0xcc3   : > { %989 = vtanh.f32 %v643_v56 }
 0xcc9   : > { %v990_v57 = vpop.eup %989 }
 0xcca   : > { %647 = vrot.lane.b32.xlu2 %v990_v57, %s1044_s12 }
 0xd24   : > { %v648_v59 = vpop.permute.xlu2 %647 }
 0xd25   : > { %v650_v61 = vmul.f32 %v648_v59, %v645_v58 }
 0xd27   : > { %v1179_v63 = vadd.f32 %v651_v60, %v650_v61 }
 0xd29   : > { %v661_v1 = vpack.c.bf16 %v1179_v63, %v1179_v63 }
 0xd2b   : > { %663 = vrot.lane.b32.xlu0 %v661_v1, %s1044_s12 }
 0xd9d   : > { %v664_v2 = vpop.permute.xlu0 %663 }
 0xd9e   : > { %922 = vmatmul.msk.bf16.vlgmr.msrb.gmra.mxu2 %vm258_vm1, %v664_v2 }
 0xe21   : > { %v677_v3 = vpop.f32.mrf.mxu2 }
 0xe22   : > { %v678_v4 = vadd.f32 %v1112_v5, %v677_v3 }
 0xe24   : > { %702 = vrot.lane.b32.xlu1 %v678_v4, %s1043_s11  ;;  %v681_v8 = vadd.f32 %v921_v7, %v678_v4 }
 0xe26   : > { %v923_v9 = vmul.f32 -1.442695, %v681_v8 }
 0xe28   : > { %991 = vpow2.f32 %v923_v9 }
 0xe29   : > { %v679_v6 = vpop.f32.mrf.mxu2 }
 0xe2e   : > { %v992_v10 = vpop.eup %991 }
 0xe2f   : > { %v685_v11 = vadd.f32 1.0, %v992_v10 }
 0xe31   : > { %993 = vrcp.f32 %v685_v11  ;;  %v697_v17 = vand.u32 2147483648, %v685_v11  ;;  %vm691_vm12 = vweird.f32 %v685_v11  ;;  %v695_v18 = vand.u32 2147483647, %v685_v11 }
 0xe33   : > { %v698_v20 = vor.u32 1.1754944e-38, %v697_v17  ;;  %vm696_vm14 = vcmp.eq.f32.partialorder %v695_v18, 8.507059e+37 }
 0xe37   : > { %v994_v12 = vpop.eup %993 }
 0xe38   : > { %v687_v13 = vmul.f32 %v994_v12, %v685_v11  ;;  %vm692_vm11 = vweird.f32 %v994_v12 }
 0xe39   : > { %vm693_vm13 = vmor %vm691_vm12, %vm692_vm11 }
 0xe3a   : > { %v688_v14 = vsub.f32 1.0, %v687_v13 }
 0xe3c   : > { %v689_v15 = vmul.f32 %v994_v12, %v688_v14 }
 0xe3e   : > { %v690_v16 = vadd.f32 %v994_v12, %v689_v15 }
 0xe40   : > { %v694_v19 = vsel %vm693_vm13, %v994_v12, %v690_v16 }
 0xe41   : > { %v699_v22 = vsel %vm696_vm14, %v698_v20, %v694_v19 }
 0xe42   : > { %v712_v27 = vsub.f32 1.0, %v699_v22  ;;  %v718_v29 = vmul.f32 %v699_v22, %v1179_v63 }
 0xe96   : > { %v703_v21 = vpop.permute.xlu1 %702 }
 0xe97   : > { %v705_v23 = vmul.f32 %v703_v21, %v699_v22 }
 0xe99   : > { %707 = vrot.lane.b32.xlu2 %v705_v23, %s1043_s11 }
 0xef3   : > { %v708_v24 = vpop.permute.xlu2 %707 }
 0xef4   : > { %v710_v25 = vadd.f32 %v921_v7, %v708_v24 }
 0xef6   : > { %995 = vtanh.f32 %v710_v25 }
 0xefc   : > { %v996_v26 = vpop.eup %995 }
 0xefd   : > { %714 = vrot.lane.b32.xlu0 %v996_v26, %s1044_s12 }
 0xf6f   : > { %v715_v28 = vpop.permute.xlu0 %714 }
 0xf70   : > { %v717_v32 = vmul.f32 %v715_v28, %v712_v27 }
 0xf72   : > { %v719_v33 = vadd.f32 %v718_v29, %v717_v32 }
 0xf74   : > { %v728_v35 = vpack.c.bf16 %v719_v33, %v719_v33 }
 0xf76   : > { %730 = vrot.lane.b32.xlu1 %v728_v35, %s1044_s12 }
 0xfe8   : > { %v731_v36 = vpop.permute.xlu1 %730 }
 0xfe9   : > { %926 = vmatmul.msk.bf16.vlgmr.msrb.gmra.mxu3 %vm258_vm1, %v731_v36 }
0x106c   : > { %v744_v37 = vpop.f32.mrf.mxu3 }
0x106d   : > { %v745_v38 = vadd.f32 %v1112_v5, %v744_v37 }
0x106f   : > { %769 = vrot.lane.b32.xlu2 %v745_v38, %s1043_s11  ;;  %v748_v41 = vadd.f32 %v925_v40, %v745_v38 }
0x1071   : > { %v927_v42 = vmul.f32 -1.442695, %v748_v41 }
0x1073   : > { %997 = vpow2.f32 %v927_v42 }
0x1074   : > { %v746_v39 = vpop.f32.mrf.mxu3 }
0x1077   : > { %319 = vrot.lane.b32.xlu2 %v1119_v34, %s1044_s12 }
0x1079   : > { %v998_v43 = vpop.eup %997 }
0x107a   : > { %v752_v44 = vadd.f32 1.0, %v998_v43 }
0x107c   : > { %999 = vrcp.f32 %v752_v44  ;;  %v764_v34 = vand.u32 2147483648, %v752_v44  ;;  %vm758_vm15 = vweird.f32 %v752_v44 }
0x107e   : > { %v765_v50 = vor.u32 1.1754944e-38, %v764_v34 }
0x107f   : > { %520 = vrot.lane.b32.xlu2 %v1155_v62, %s1044_s12  ;;  %v762_v62 = vand.u32 2147483647, %v752_v44 }
0x1081   : > { %vm763_vm2 = vcmp.eq.f32.partialorder %v762_v62, 8.507059e+37 }
0x1082   : > { %v1000_v45 = vpop.eup %999 }
0x1083   : > { %v754_v5 = vmul.f32 %v1000_v45, %v752_v44  ;;  %vm759_vm1 = vweird.f32 %v1000_v45 }
0x1084   : > { %vm760_vm0 = vmor %vm758_vm15, %vm759_vm1 }
0x1085   : > { %v755_v46 = vsub.f32 1.0, %v754_v5 }
0x1087   : > { %721 = vrot.lane.b32.xlu2 %v719_v33, %s1044_s12  ;;  %v756_v47 = vmul.f32 %v1000_v45, %v755_v46 }
0x1089   : > { %v757_v48 = vadd.f32 %v1000_v45, %v756_v47 }
0x108b   : > { %v761_v49 = vsel %vm760_vm0, %v1000_v45, %v757_v48 }
0x108c   : > { %v766_v52 = vsel %vm763_vm2, %v765_v50, %v761_v49 }
0x108d   : > { %v785_v1 = vmul.f32 %v766_v52, %v719_v33 }
0x10c9   : > { %v770_v51 = vpop.permute.xlu2 %769 }
0x10ca   : > { %v772_v53 = vmul.f32 %v770_v51, %v766_v52 }
0x10cc   : > { %774 = vrot.lane.b32.xlu0 %v772_v53, %s1043_s11 }
0x10d1   : > { %v320_v54 = vpop.permute.xlu2 %319 }
0x10d2   : > { %323 = vst.msk [vmem:[%s1096_s27] sm:$0x3] %vm322_vm3, %v320_v54 }
0x10d4   : > { %386 = vrot.lane.b32.xlu0 %v1131_v0, %s1044_s12 }
0x10d9   : > { %v521_v55 = vpop.permute.xlu2 %520 }
0x10da   : > { %912 = vst.msk [vmem:[%s1096_s27 + $0x6] sm:$0x3] %vm322_vm3, %v521_v55 }
0x10dc   : > { %587 = vrot.lane.b32.xlu0 %v1167_v30, %s1044_s12  ;;  %v779_v30 = vsub.f32 1.0, %v766_v52 }
0x10e1   : > { %v722_v56 = vpop.permute.xlu2 %721 }
0x10e2   : > { %924 = vst.msk [vmem:[%s1096_s27 + $0xc] sm:$0x3] %vm322_vm3, %v722_v56 }
0x113e   : > { %v775_v57 = vpop.permute.xlu0 %774 }
0x113f   : > { %v777_v58 = vadd.f32 %v925_v40, %v775_v57 }
0x1141   : > { %1001 = vtanh.f32 %v777_v58 }
0x1146   : > { %v387_v59 = vpop.permute.xlu0 %386 }
0x1147   : > { %v1002_v60 = vpop.eup %1001  ;;  %904 = vst.msk [vmem:[%s1096_s27 + $0x2] sm:$0x3] %vm322_vm3, %v387_v59 }
0x1148   : > { %781 = vrot.lane.b32.xlu1 %v1002_v60, %s1044_s12 }
0x114e   : > { %v588_v0 = vpop.permute.xlu0 %587 }
0x114f   : > { %916 = vst.msk [vmem:[%s1096_s27 + $0x8] sm:$0x3] %vm322_vm3, %v588_v0 }
0x1150   : > { %453 = vrot.lane.b32.xlu1 %v1143_v31, %s1044_s12 }
0x1158   : > { %654 = vrot.lane.b32.xlu1 %v1179_v63, %s1044_s12 }
0x11ba   : > { %v782_v61 = vpop.permute.xlu1 %781 }
0x11bb   : > { %v784_v2 = vmul.f32 %v782_v61, %v779_v30 }
0x11bd   : > { %v786_v3 = vadd.f32 %v785_v1, %v784_v2 }
0x11bf   : > { %788 = vrot.lane.b32.xlu0 %v786_v3, %s1044_s12 }
0x11c2   : > { %v454_v4 = vpop.permute.xlu1 %453 }
0x11c3   : > { %908 = vst.msk [vmem:[%s1096_s27 + $0x4] sm:$0x3] %vm322_vm3, %v454_v4 }
0x11ca   : > { %v655_v6 = vpop.permute.xlu1 %654 }
0x11cb   : > { %920 = vst.msk [vmem:[%s1096_s27 + $0xa] sm:$0x3] %vm322_vm3, %v655_v6 }
0x122f   : > { %797 = sbr.rel (%p929_p5) target bundleno = 4661 (0x1235), region = 44 }
0x1231   : > { %v789_v7 = vpop.permute.xlu0 %788 }
0x1232   : > { %928 = vst.msk [vmem:[%s1096_s27 + $0xe] sm:$0x3] %vm322_vm3, %v789_v7 }
0x1233   : > { %793 = vst.msk [vmem:[#allocation2] sm:$0x3] %vm322_vm3, %v789_v7 }
0x1234   : > { %798 = vst.msk [vmem:[#allocation3] sm:$0x3] %vm322_vm3, %v789_v7 }
0x1235 PF: > { %p940_p6 = scmp.eq.s32.totalorder %s1083_s19, 1  ;;  %s1046_s14 = smov [#allocation3]  }
0x1236   : > { %s814_s15 = sshll.u32 %s1046_s14, 4  ;;  %s816_s20 = sshll.u32 %s1243_s5, 4  ;;  %s815_s15 = int_to_ptr.vmem [resolvable:$true] %s814_s15  ;;  %s817_s20 = int_to_ptr.hbm [resolvable:$true] %s816_s20 }
0x1237   : > { %937 = dma.vmem_to_hbm [thread:$0]  (%p940_p6), %s815_s15, 32, %s817_s20, [#allocation4]  }
0x1238   : > { %1036 = dma.done.wait (%p940_p6), [#allocation4], 32  }
0x1239   : > { %1038 = vsyncadd (%p940_p6), [#allocation4], 4294967264 }
0x123a PF: > { %s17_s18 = sadd.s32 1, %s1041_s18  }
0x123b   : > { %p14_p7 = scmp.ge.s32.totalorder %s17_s18, 4  }
0x123d   :  { %16 = sbr.rel (!%p14_p7) target bundleno = 1 (0x1), region = 97 }
0x1242   :  { %838 = vsyncpa [#allocation4], 1 }
0x1243   :  { %840 = vsyncpa [#allocation4 + $0x1], 1 }

</bundles_post_ra>
